<compile_context>
chip_gen: v6e
topology: v6e:2x2x1
jax: 0.10.0
libtpu: 0.0.40
codegen_flags: <defaults>
</compile_context>

<pallas_src>
import functools

import jax
import jax.numpy as jnp
import numpy as np
from jax.experimental import pallas as pl
from jax.experimental.pallas import tpu as pltpu

EPS = 1e-5


# ---------------------------------------------------------------------------
# Kernel 1: direct 3x3x3 conv (stride 1, pad 1) + per-channel sum / sumsq
# ---------------------------------------------------------------------------
def _conv3x3x3_stats_kernel(x0_ref, x1_ref, x2_ref, w_ref, conv_ref, stats_ref,
                            *, H, W):
    # x{0,1,2}_ref : (H+2, W+2, Cin) bf16  -- padded depth slices d, d+1, d+2
    # w_ref        : (27, Cin, Cout) bf16  -- tap-major weights
    # conv_ref     : (H*W, Cout) f32       -- raw conv output for this (n, d)
    # stats_ref    : (2, Cout) f32         -- resident per-n [sum; sumsq] accumulator
    d = pl.program_id(1)
    cin = w_ref.shape[1]
    cout = w_ref.shape[2]

    acc = jnp.zeros((H * W, cout), jnp.float32)
    slabs = (x0_ref, x1_ref, x2_ref)
    for kd in range(3):
        slab = slabs[kd][...]                                  # (H+2, W+2, Cin)
        for kh in range(3):
            for kw in range(3):
                patch = slab[kh:kh + H, kw:kw + W, :].reshape(H * W, cin)
                wk = w_ref[kd * 9 + kh * 3 + kw]               # (Cin, Cout)
                acc += jnp.dot(patch, wk, preferred_element_type=jnp.float32)

    conv_ref[...] = acc

    s = jnp.sum(acc, axis=0, keepdims=True)                    # (1, Cout)
    ss = jnp.sum(acc * acc, axis=0, keepdims=True)             # (1, Cout)

    @pl.when(d == 0)
    def _():
        stats_ref[...] = jnp.zeros_like(stats_ref)

    stats_ref[...] += jnp.concatenate([s, ss], axis=0)


def _conv3x3x3_stats(xp, w_taps, H, W):
    """xp: zero-padded bf16 activations [N, D+2, H+2, W+2, Cin].
    w_taps: [27, Cin, Cout] bf16.
    Returns (conv_raw [N, D, H*W, Cout] f32, stats [N, 2, Cout] f32)."""
    N, Dp2, Hp2, Wp2, Cin = xp.shape
    D = Dp2 - 2
    Cout = w_taps.shape[-1]

    x_spec0 = pl.BlockSpec((None, None, Hp2, Wp2, Cin), lambda n, d: (n, d, 0, 0, 0))
    x_spec1 = pl.BlockSpec((None, None, Hp2, Wp2, Cin), lambda n, d: (n, d + 1, 0, 0, 0))
    x_spec2 = pl.BlockSpec((None, None, Hp2, Wp2, Cin), lambda n, d: (n, d + 2, 0, 0, 0))
    w_spec = pl.BlockSpec((27, Cin, Cout), lambda n, d: (0, 0, 0))

    return pl.pallas_call(
        functools.partial(_conv3x3x3_stats_kernel, H=H, W=W),
        out_shape=(jax.ShapeDtypeStruct((N, D, H * W, Cout), jnp.float32),
                   jax.ShapeDtypeStruct((N, 2, Cout), jnp.float32)),
        grid=(N, D),
        in_specs=[x_spec0, x_spec1, x_spec2, w_spec],
        out_specs=(pl.BlockSpec((None, None, H * W, Cout), lambda n, d: (n, d, 0, 0)),
                   pl.BlockSpec((None, 2, Cout), lambda n, d: (n, 0, 0))),
        compiler_params=pltpu.CompilerParams(
            dimension_semantics=("parallel", "arbitrary")),
    )(xp, xp, xp, w_taps)


# ---------------------------------------------------------------------------
# Kernel 2: lane-dense scale/shift (+ residual) + ReLU
# ---------------------------------------------------------------------------
def _bn_relu_kernel(y_ref, s_ref, b_ref, o_ref):
    y = y_ref[...] * s_ref[...] + b_ref[...]
    o_ref[...] = jnp.maximum(y, 0.0).astype(o_ref.dtype)


def _bn_add_relu_kernel(y_ref, s_ref, b_ref, r_ref, o_ref):
    y = y_ref[...] * s_ref[...] + b_ref[...] + r_ref[...]
    o_ref[...] = jnp.maximum(y, 0.0).astype(o_ref.dtype)


def _bn_act(y, scale_row, shift_row, out_dtype, residual=None, max_rows=512):
    """Elementwise y*scale + shift [+ residual] -> ReLU over a [Mp, L] slab."""
    Mp, L = y.shape
    tile = Mp if Mp <= max_rows else max_rows
    row_spec = pl.BlockSpec((tile, L), lambda i: (i, 0))
    vec_spec = pl.BlockSpec((1, L), lambda i: (0, 0))

    if residual is None:
        kern = _bn_relu_kernel
        in_specs = [row_spec, vec_spec, vec_spec]
        args = (y, scale_row, shift_row)
    else:
        kern = _bn_add_relu_kernel
        in_specs = [row_spec, vec_spec, vec_spec, row_spec]
        args = (y, scale_row, shift_row, residual)

    return pl.pallas_call(
        kern,
        out_shape=jax.ShapeDtypeStruct((Mp, L), out_dtype),
        grid=(pl.cdiv(Mp, tile),),
        in_specs=in_specs,
        out_specs=row_spec,
        compiler_params=pltpu.CompilerParams(dimension_semantics=("parallel",)),
    )(*args)


# ---------------------------------------------------------------------------
# Host-side glue
# ---------------------------------------------------------------------------
def _pad_dhw(x):
    return jnp.pad(x, ((0, 0), (1, 1), (1, 1), (1, 1), (0, 0)))


def _weight_to_taps(w):
    # PyTorch [Cout, Cin, kD, kH, kW] -> [27, Cin, Cout] (tap-major), bf16
    cout, cin = w.shape[0], w.shape[1]
    return jnp.transpose(w, (2, 3, 4, 1, 0)).reshape(27, cin, cout).astype(jnp.bfloat16)


def _bn_scale_shift(stats, count, gamma, beta, eps):
    # stats: [N, 2, C] partial (sum, sumsq); fold into per-channel scale/shift.
    s = jnp.sum(stats[:, 0, :], axis=0)
    ss = jnp.sum(stats[:, 1, :], axis=0)
    mean = s / count
    var = jnp.maximum(ss / count - mean * mean, 0.0)
    scale = gamma * jax.lax.rsqrt(var + eps)
    shift = beta - mean * scale
    return scale, shift


def _lane_pack(c, rows):
    # pack consecutive spatial positions so the elementwise pass sees >=128 lanes
    if c >= 128 or 128 % c != 0:
        return 1
    p = 128 // c
    return p if rows % p == 0 else 1


def basic_block_forward(x, w1, g1, b1, w2, g2, b2, eps=EPS):
    """BasicBlock forward (stride=1, downsample=None).  x: [N, D, H, W, C] NDHWC."""
    N, D, H, W, C = x.shape
    assert w1.shape[1] == C and w1.shape[0] == w2.shape[0] == w2.shape[1] == C, \
        "stride-1 BasicBlock requires inplanes == planes"

    M = N * D * H * W
    pack = _lane_pack(C, M)
    L = pack * C

    w1_taps = _weight_to_taps(w1)
    w2_taps = _weight_to_taps(w2)

    # ---- conv1 + batch statistics (tiled over (n, depth)) ----
    xp = _pad_dhw(x.astype(jnp.bfloat16))
    conv1, stats1 = _conv3x3x3_stats(xp, w1_taps, H, W)
    scale1, shift1 = _bn_scale_shift(stats1, M, g1, b1, eps)

    # ---- bn1 + relu1 (lane-dense elementwise pass); bf16 out feeds conv2 ----
    out1 = _bn_act(conv1.reshape(M // pack, L),
                   jnp.tile(scale1, pack)[None, :],
                   jnp.tile(shift1, pack)[None, :],
                   out_dtype=jnp.bfloat16)
    out1 = out1.reshape(N, D, H, W, C)

    # ---- conv2 + batch statistics ----
    conv2, stats2 = _conv3x3x3_stats(_pad_dhw(out1), w2_taps, H, W)
    scale2, shift2 = _bn_scale_shift(stats2, M, g2, b2, eps)

    # ---- bn2 + residual add + relu ----
    out2 = _bn_act(conv2.reshape(M // pack, L),
                   jnp.tile(scale2, pack)[None, :],
                   jnp.tile(shift2, pack)[None, :],
                   out_dtype=jnp.float32,
                   residual=x.reshape(M // pack, L))
    return out2.reshape(N, D, H, W, C)


# ---------------------------------------------------------------------------
# Pure-JAX reference (mirrors the kernel's bf16 matmul path, f32 BN math)
# ---------------------------------------------------------------------------
def basic_block_reference(x, w1, g1, b1, w2, g2, b2, eps=EPS):
    def conv(a, w):
        w_dhwio = jnp.transpose(w, (2, 3, 4, 1, 0)).astype(jnp.bfloat16)
        return jax.lax.conv_general_dilated(
            a.astype(jnp.bfloat16), w_dhwio, window_strides=(1, 1, 1),
            padding="SAME", dimension_numbers=("NDHWC", "DHWIO", "NDHWC"),
            preferred_element_type=jnp.float32)

    def bn(a, g, b):
        mean = jnp.mean(a, axis=(0, 1, 2, 3), keepdims=True)
        var = jnp.mean(jnp.square(a - mean), axis=(0, 1, 2, 3), keepdims=True)
        return (a - mean) * jax.lax.rsqrt(var + eps) * g.reshape(1, 1, 1, 1, -1) \
            + b.reshape(1, 1, 1, 1, -1)

    out1 = jax.nn.relu(bn(conv(x, w1), g1, b1)).astype(jnp.bfloat16)
    out2 = bn(conv(out1, w2), g2, b2)
    return jax.nn.relu(out2 + x)


# ---------------------------------------------------------------------------
if __name__ == "__main__":
    # BasicBlock(inplanes=8, planes=8, stride=1, downsample=None)
    N, D, H, W = 2, 8, 8, 8
    inplanes = planes = 8

    key = jax.random.PRNGKey(0)
    k_x, k_w1, k_w2 = jax.random.split(key, 3)

    x = jax.random.normal(k_x, (N, D, H, W, inplanes), dtype=jnp.float32)

    # conv weights: kaiming-like init, PyTorch layout [Cout, Cin, 3, 3, 3]
    w1 = jax.random.normal(k_w1, (planes, inplanes, 3, 3, 3), jnp.float32) \
        * np.sqrt(2.0 / (inplanes * 27))
    w2 = jax.random.normal(k_w2, (planes, planes, 3, 3, 3), jnp.float32) \
        * np.sqrt(2.0 / (planes * 27))

    # BatchNorm affine params at PyTorch defaults (gamma=1, beta=0)
    g1 = jnp.ones((planes,), jnp.float32)
    b1 = jnp.zeros((planes,), jnp.float32)
    g2 = jnp.ones((planes,), jnp.float32)
    b2 = jnp.zeros((planes,), jnp.float32)

    fwd = jax.jit(basic_block_forward)
    out = jax.block_until_ready(fwd(x, w1, g1, b1, w2, g2, b2))

    ref = jax.block_until_ready(basic_block_reference(x, w1, g1, b1, w2, g2, b2))
    np.testing.assert_allclose(np.asarray(out), np.asarray(ref), rtol=1e-2, atol=1e-2)

    print("KERNEL_OK")
</pallas_src>

<mosaic_0001>
module attributes {stable_mosaic.version = 11 : i64} {
  func.func @_conv3x3x3_stats_kernel(%arg0: i32, %arg1: i32, %arg2: memref<1x1x10x10x8xbf16, #tpu.memory_space<vmem>>, %arg3: memref<1x1x10x10x8xbf16, #tpu.memory_space<vmem>>, %arg4: memref<1x1x10x10x8xbf16, #tpu.memory_space<vmem>>, %arg5: memref<27x8x8xbf16, #tpu.memory_space<vmem>>, %arg6: memref<1x1x64x8xf32, #tpu.memory_space<vmem>>, %arg7: memref<1x2x8xf32, #tpu.memory_space<vmem>>) attributes {dimension_semantics = [#tpu.dimension_semantics<parallel>, #tpu.dimension_semantics<arbitrary>], iteration_bounds = array<i64: 2, 8>, scalar_prefetch = 0 : i64, scratch_operands = 0 : i64, tpu.core_type = #tpu.core_type<tc>, window_params = [{transform_indices = @transform_0, window_bounds = array<i64: 1, 1, 10, 10, 8>}, {transform_indices = @transform_1, window_bounds = array<i64: 1, 1, 10, 10, 8>}, {transform_indices = @transform_2, window_bounds = array<i64: 1, 1, 10, 10, 8>}, {pipeline_mode = #tpu.pipeline_mode<synchronous>, transform_indices = @transform_3, window_bounds = array<i64: 27, 8, 8>}, {transform_indices = @transform_4, window_bounds = array<i64: 1, 1, 64, 8>}, {transform_indices = @transform_5, window_bounds = array<i64: 1, 2, 8>}]} {
    %cst = arith.constant 0.000000e+00 : f32
    %0 = vector.broadcast %cst : f32 to vector<64x8xf32>
    %c0 = arith.constant 0 : index
    %c0_0 = arith.constant 0 : index
    %c0_1 = arith.constant 0 : index
    %c0_2 = arith.constant 0 : index
    %c0_3 = arith.constant 0 : index
    %1 = vector.load %arg2[%c0, %c0_0, %c0_1, %c0_2, %c0_3] : memref<1x1x10x10x8xbf16, #tpu.memory_space<vmem>>, vector<1x1x10x10x8xbf16>
    %2 = vector.shape_cast %1 : vector<1x1x10x10x8xbf16> to vector<10x10x8xbf16>
    %3 = vector.extract_strided_slice %2 {offsets = [0, 0, 0], sizes = [8, 8, 8], strides = [1, 1, 1]} : vector<10x10x8xbf16> to vector<8x8x8xbf16>
    %4 = vector.shape_cast %3 : vector<8x8x8xbf16> to vector<64x8xbf16>
    %c0_4 = arith.constant 0 : index
    %c0_5 = arith.constant 0 : index
    %c0_6 = arith.constant 0 : index
    %5 = vector.load %arg5[%c0_4, %c0_5, %c0_6] : memref<27x8x8xbf16, #tpu.memory_space<vmem>>, vector<1x8x8xbf16>
    %6 = vector.shape_cast %5 : vector<1x8x8xbf16> to vector<8x8xbf16>
    %cst_7 = arith.constant dense<0.000000e+00> : vector<64x8xf32>
    %7 = tpu.matmul %4, %6, %cst_7 {dimension_numbers = #tpu.dot_dimension_numbers<[1], [0], [0], [1], [0, 0, 1, 1], [], []>} : vector<64x8xbf16>, vector<8x8xbf16>, vector<64x8xf32> -> vector<64x8xf32>
    %8 = arith.addf %0, %7 : vector<64x8xf32>
    %9 = vector.extract_strided_slice %2 {offsets = [0, 1, 0], sizes = [8, 8, 8], strides = [1, 1, 1]} : vector<10x10x8xbf16> to vector<8x8x8xbf16>
    %10 = vector.shape_cast %9 : vector<8x8x8xbf16> to vector<64x8xbf16>
    %c1 = arith.constant 1 : index
    %c0_8 = arith.constant 0 : index
    %c0_9 = arith.constant 0 : index
    %11 = vector.load %arg5[%c1, %c0_8, %c0_9] : memref<27x8x8xbf16, #tpu.memory_space<vmem>>, vector<1x8x8xbf16>
    %12 = vector.shape_cast %11 : vector<1x8x8xbf16> to vector<8x8xbf16>
    %cst_10 = arith.constant dense<0.000000e+00> : vector<64x8xf32>
    %13 = tpu.matmul %10, %12, %cst_10 {dimension_numbers = #tpu.dot_dimension_numbers<[1], [0], [0], [1], [0, 0, 1, 1], [], []>} : vector<64x8xbf16>, vector<8x8xbf16>, vector<64x8xf32> -> vector<64x8xf32>
    %14 = arith.addf %8, %13 : vector<64x8xf32>
    %15 = vector.extract_strided_slice %2 {offsets = [0, 2, 0], sizes = [8, 8, 8], strides = [1, 1, 1]} : vector<10x10x8xbf16> to vector<8x8x8xbf16>
    %16 = vector.shape_cast %15 : vector<8x8x8xbf16> to vector<64x8xbf16>
    %c2 = arith.constant 2 : index
    %c0_11 = arith.constant 0 : index
    %c0_12 = arith.constant 0 : index
    %17 = vector.load %arg5[%c2, %c0_11, %c0_12] : memref<27x8x8xbf16, #tpu.memory_space<vmem>>, vector<1x8x8xbf16>
    %18 = vector.shape_cast %17 : vector<1x8x8xbf16> to vector<8x8xbf16>
    %cst_13 = arith.constant dense<0.000000e+00> : vector<64x8xf32>
    %19 = tpu.matmul %16, %18, %cst_13 {dimension_numbers = #tpu.dot_dimension_numbers<[1], [0], [0], [1], [0, 0, 1, 1], [], []>} : vector<64x8xbf16>, vector<8x8xbf16>, vector<64x8xf32> -> vector<64x8xf32>
    %20 = arith.addf %14, %19 : vector<64x8xf32>
    %21 = vector.extract_strided_slice %2 {offsets = [1, 0, 0], sizes = [8, 8, 8], strides = [1, 1, 1]} : vector<10x10x8xbf16> to vector<8x8x8xbf16>
    %22 = vector.shape_cast %21 : vector<8x8x8xbf16> to vector<64x8xbf16>
    %c3 = arith.constant 3 : index
    %c0_14 = arith.constant 0 : index
    %c0_15 = arith.constant 0 : index
    %23 = vector.load %arg5[%c3, %c0_14, %c0_15] : memref<27x8x8xbf16, #tpu.memory_space<vmem>>, vector<1x8x8xbf16>
    %24 = vector.shape_cast %23 : vector<1x8x8xbf16> to vector<8x8xbf16>
    %cst_16 = arith.constant dense<0.000000e+00> : vector<64x8xf32>
    %25 = tpu.matmul %22, %24, %cst_16 {dimension_numbers = #tpu.dot_dimension_numbers<[1], [0], [0], [1], [0, 0, 1, 1], [], []>} : vector<64x8xbf16>, vector<8x8xbf16>, vector<64x8xf32> -> vector<64x8xf32>
    %26 = arith.addf %20, %25 : vector<64x8xf32>
    %27 = vector.extract_strided_slice %2 {offsets = [1, 1, 0], sizes = [8, 8, 8], strides = [1, 1, 1]} : vector<10x10x8xbf16> to vector<8x8x8xbf16>
    %28 = vector.shape_cast %27 : vector<8x8x8xbf16> to vector<64x8xbf16>
    %c4 = arith.constant 4 : index
    %c0_17 = arith.constant 0 : index
    %c0_18 = arith.constant 0 : index
    %29 = vector.load %arg5[%c4, %c0_17, %c0_18] : memref<27x8x8xbf16, #tpu.memory_space<vmem>>, vector<1x8x8xbf16>
    %30 = vector.shape_cast %29 : vector<1x8x8xbf16> to vector<8x8xbf16>
    %cst_19 = arith.constant dense<0.000000e+00> : vector<64x8xf32>
    %31 = tpu.matmul %28, %30, %cst_19 {dimension_numbers = #tpu.dot_dimension_numbers<[1], [0], [0], [1], [0, 0, 1, 1], [], []>} : vector<64x8xbf16>, vector<8x8xbf16>, vector<64x8xf32> -> vector<64x8xf32>
    %32 = arith.addf %26, %31 : vector<64x8xf32>
    %33 = vector.extract_strided_slice %2 {offsets = [1, 2, 0], sizes = [8, 8, 8], strides = [1, 1, 1]} : vector<10x10x8xbf16> to vector<8x8x8xbf16>
    %34 = vector.shape_cast %33 : vector<8x8x8xbf16> to vector<64x8xbf16>
    %c5 = arith.constant 5 : index
    %c0_20 = arith.constant 0 : index
    %c0_21 = arith.constant 0 : index
    %35 = vector.load %arg5[%c5, %c0_20, %c0_21] : memref<27x8x8xbf16, #tpu.memory_space<vmem>>, vector<1x8x8xbf16>
    %36 = vector.shape_cast %35 : vector<1x8x8xbf16> to vector<8x8xbf16>
    %cst_22 = arith.constant dense<0.000000e+00> : vector<64x8xf32>
    %37 = tpu.matmul %34, %36, %cst_22 {dimension_numbers = #tpu.dot_dimension_numbers<[1], [0], [0], [1], [0, 0, 1, 1], [], []>} : vector<64x8xbf16>, vector<8x8xbf16>, vector<64x8xf32> -> vector<64x8xf32>
    %38 = arith.addf %32, %37 : vector<64x8xf32>
    %39 = vector.extract_strided_slice %2 {offsets = [2, 0, 0], sizes = [8, 8, 8], strides = [1, 1, 1]} : vector<10x10x8xbf16> to vector<8x8x8xbf16>
    %40 = vector.shape_cast %39 : vector<8x8x8xbf16> to vector<64x8xbf16>
    %c6 = arith.constant 6 : index
    %c0_23 = arith.constant 0 : index
    %c0_24 = arith.constant 0 : index
    %41 = vector.load %arg5[%c6, %c0_23, %c0_24] : memref<27x8x8xbf16, #tpu.memory_space<vmem>>, vector<1x8x8xbf16>
    %42 = vector.shape_cast %41 : vector<1x8x8xbf16> to vector<8x8xbf16>
    %cst_25 = arith.constant dense<0.000000e+00> : vector<64x8xf32>
    %43 = tpu.matmul %40, %42, %cst_25 {dimension_numbers = #tpu.dot_dimension_numbers<[1], [0], [0], [1], [0, 0, 1, 1], [], []>} : vector<64x8xbf16>, vector<8x8xbf16>, vector<64x8xf32> -> vector<64x8xf32>
    %44 = arith.addf %38, %43 : vector<64x8xf32>
    %45 = vector.extract_strided_slice %2 {offsets = [2, 1, 0], sizes = [8, 8, 8], strides = [1, 1, 1]} : vector<10x10x8xbf16> to vector<8x8x8xbf16>
    %46 = vector.shape_cast %45 : vector<8x8x8xbf16> to vector<64x8xbf16>
    %c7 = arith.constant 7 : index
    %c0_26 = arith.constant 0 : index
    %c0_27 = arith.constant 0 : index
    %47 = vector.load %arg5[%c7, %c0_26, %c0_27] : memref<27x8x8xbf16, #tpu.memory_space<vmem>>, vector<1x8x8xbf16>
    %48 = vector.shape_cast %47 : vector<1x8x8xbf16> to vector<8x8xbf16>
    %cst_28 = arith.constant dense<0.000000e+00> : vector<64x8xf32>
    %49 = tpu.matmul %46, %48, %cst_28 {dimension_numbers = #tpu.dot_dimension_numbers<[1], [0], [0], [1], [0, 0, 1, 1], [], []>} : vector<64x8xbf16>, vector<8x8xbf16>, vector<64x8xf32> -> vector<64x8xf32>
    %50 = arith.addf %44, %49 : vector<64x8xf32>
    %51 = vector.extract_strided_slice %2 {offsets = [2, 2, 0], sizes = [8, 8, 8], strides = [1, 1, 1]} : vector<10x10x8xbf16> to vector<8x8x8xbf16>
    %52 = vector.shape_cast %51 : vector<8x8x8xbf16> to vector<64x8xbf16>
    %c8 = arith.constant 8 : index
    %c0_29 = arith.constant 0 : index
    %c0_30 = arith.constant 0 : index
    %53 = vector.load %arg5[%c8, %c0_29, %c0_30] : memref<27x8x8xbf16, #tpu.memory_space<vmem>>, vector<1x8x8xbf16>
    %54 = vector.shape_cast %53 : vector<1x8x8xbf16> to vector<8x8xbf16>
    %cst_31 = arith.constant dense<0.000000e+00> : vector<64x8xf32>
    %55 = tpu.matmul %52, %54, %cst_31 {dimension_numbers = #tpu.dot_dimension_numbers<[1], [0], [0], [1], [0, 0, 1, 1], [], []>} : vector<64x8xbf16>, vector<8x8xbf16>, vector<64x8xf32> -> vector<64x8xf32>
    %56 = arith.addf %50, %55 : vector<64x8xf32>
    %c0_32 = arith.constant 0 : index
    %c0_33 = arith.constant 0 : index
    %c0_34 = arith.constant 0 : index
    %c0_35 = arith.constant 0 : index
    %c0_36 = arith.constant 0 : index
    %57 = vector.load %arg3[%c0_32, %c0_33, %c0_34, %c0_35, %c0_36] : memref<1x1x10x10x8xbf16, #tpu.memory_space<vmem>>, vector<1x1x10x10x8xbf16>
    %58 = vector.shape_cast %57 : vector<1x1x10x10x8xbf16> to vector<10x10x8xbf16>
    %59 = vector.extract_strided_slice %58 {offsets = [0, 0, 0], sizes = [8, 8, 8], strides = [1, 1, 1]} : vector<10x10x8xbf16> to vector<8x8x8xbf16>
    %60 = vector.shape_cast %59 : vector<8x8x8xbf16> to vector<64x8xbf16>
    %c9 = arith.constant 9 : index
    %c0_37 = arith.constant 0 : index
    %c0_38 = arith.constant 0 : index
    %61 = vector.load %arg5[%c9, %c0_37, %c0_38] : memref<27x8x8xbf16, #tpu.memory_space<vmem>>, vector<1x8x8xbf16>
    %62 = vector.shape_cast %61 : vector<1x8x8xbf16> to vector<8x8xbf16>
    %cst_39 = arith.constant dense<0.000000e+00> : vector<64x8xf32>
    %63 = tpu.matmul %60, %62, %cst_39 {dimension_numbers = #tpu.dot_dimension_numbers<[1], [0], [0], [1], [0, 0, 1, 1], [], []>} : vector<64x8xbf16>, vector<8x8xbf16>, vector<64x8xf32> -> vector<64x8xf32>
    %64 = arith.addf %56, %63 : vector<64x8xf32>
    %65 = vector.extract_strided_slice %58 {offsets = [0, 1, 0], sizes = [8, 8, 8], strides = [1, 1, 1]} : vector<10x10x8xbf16> to vector<8x8x8xbf16>
    %66 = vector.shape_cast %65 : vector<8x8x8xbf16> to vector<64x8xbf16>
    %c10 = arith.constant 10 : index
    %c0_40 = arith.constant 0 : index
    %c0_41 = arith.constant 0 : index
    %67 = vector.load %arg5[%c10, %c0_40, %c0_41] : memref<27x8x8xbf16, #tpu.memory_space<vmem>>, vector<1x8x8xbf16>
    %68 = vector.shape_cast %67 : vector<1x8x8xbf16> to vector<8x8xbf16>
    %cst_42 = arith.constant dense<0.000000e+00> : vector<64x8xf32>
    %69 = tpu.matmul %66, %68, %cst_42 {dimension_numbers = #tpu.dot_dimension_numbers<[1], [0], [0], [1], [0, 0, 1, 1], [], []>} : vector<64x8xbf16>, vector<8x8xbf16>, vector<64x8xf32> -> vector<64x8xf32>
    %70 = arith.addf %64, %69 : vector<64x8xf32>
    %71 = vector.extract_strided_slice %58 {offsets = [0, 2, 0], sizes = [8, 8, 8], strides = [1, 1, 1]} : vector<10x10x8xbf16> to vector<8x8x8xbf16>
    %72 = vector.shape_cast %71 : vector<8x8x8xbf16> to vector<64x8xbf16>
    %c11 = arith.constant 11 : index
    %c0_43 = arith.constant 0 : index
    %c0_44 = arith.constant 0 : index
    %73 = vector.load %arg5[%c11, %c0_43, %c0_44] : memref<27x8x8xbf16, #tpu.memory_space<vmem>>, vector<1x8x8xbf16>
    %74 = vector.shape_cast %73 : vector<1x8x8xbf16> to vector<8x8xbf16>
    %cst_45 = arith.constant dense<0.000000e+00> : vector<64x8xf32>
    %75 = tpu.matmul %72, %74, %cst_45 {dimension_numbers = #tpu.dot_dimension_numbers<[1], [0], [0], [1], [0, 0, 1, 1], [], []>} : vector<64x8xbf16>, vector<8x8xbf16>, vector<64x8xf32> -> vector<64x8xf32>
    %76 = arith.addf %70, %75 : vector<64x8xf32>
    %77 = vector.extract_strided_slice %58 {offsets = [1, 0, 0], sizes = [8, 8, 8], strides = [1, 1, 1]} : vector<10x10x8xbf16> to vector<8x8x8xbf16>
    %78 = vector.shape_cast %77 : vector<8x8x8xbf16> to vector<64x8xbf16>
    %c12 = arith.constant 12 : index
    %c0_46 = arith.constant 0 : index
    %c0_47 = arith.constant 0 : index
    %79 = vector.load %arg5[%c12, %c0_46, %c0_47] : memref<27x8x8xbf16, #tpu.memory_space<vmem>>, vector<1x8x8xbf16>
    %80 = vector.shape_cast %79 : vector<1x8x8xbf16> to vector<8x8xbf16>
    %cst_48 = arith.constant dense<0.000000e+00> : vector<64x8xf32>
    %81 = tpu.matmul %78, %80, %cst_48 {dimension_numbers = #tpu.dot_dimension_numbers<[1], [0], [0], [1], [0, 0, 1, 1], [], []>} : vector<64x8xbf16>, vector<8x8xbf16>, vector<64x8xf32> -> vector<64x8xf32>
    %82 = arith.addf %76, %81 : vector<64x8xf32>
    %83 = vector.extract_strided_slice %58 {offsets = [1, 1, 0], sizes = [8, 8, 8], strides = [1, 1, 1]} : vector<10x10x8xbf16> to vector<8x8x8xbf16>
    %84 = vector.shape_cast %83 : vector<8x8x8xbf16> to vector<64x8xbf16>
    %c13 = arith.constant 13 : index
    %c0_49 = arith.constant 0 : index
    %c0_50 = arith.constant 0 : index
    %85 = vector.load %arg5[%c13, %c0_49, %c0_50] : memref<27x8x8xbf16, #tpu.memory_space<vmem>>, vector<1x8x8xbf16>
    %86 = vector.shape_cast %85 : vector<1x8x8xbf16> to vector<8x8xbf16>
    %cst_51 = arith.constant dense<0.000000e+00> : vector<64x8xf32>
    %87 = tpu.matmul %84, %86, %cst_51 {dimension_numbers = #tpu.dot_dimension_numbers<[1], [0], [0], [1], [0, 0, 1, 1], [], []>} : vector<64x8xbf16>, vector<8x8xbf16>, vector<64x8xf32> -> vector<64x8xf32>
    %88 = arith.addf %82, %87 : vector<64x8xf32>
    %89 = vector.extract_strided_slice %58 {offsets = [1, 2, 0], sizes = [8, 8, 8], strides = [1, 1, 1]} : vector<10x10x8xbf16> to vector<8x8x8xbf16>
    %90 = vector.shape_cast %89 : vector<8x8x8xbf16> to vector<64x8xbf16>
    %c14 = arith.constant 14 : index
    %c0_52 = arith.constant 0 : index
    %c0_53 = arith.constant 0 : index
    %91 = vector.load %arg5[%c14, %c0_52, %c0_53] : memref<27x8x8xbf16, #tpu.memory_space<vmem>>, vector<1x8x8xbf16>
    %92 = vector.shape_cast %91 : vector<1x8x8xbf16> to vector<8x8xbf16>
    %cst_54 = arith.constant dense<0.000000e+00> : vector<64x8xf32>
    %93 = tpu.matmul %90, %92, %cst_54 {dimension_numbers = #tpu.dot_dimension_numbers<[1], [0], [0], [1], [0, 0, 1, 1], [], []>} : vector<64x8xbf16>, vector<8x8xbf16>, vector<64x8xf32> -> vector<64x8xf32>
    %94 = arith.addf %88, %93 : vector<64x8xf32>
    %95 = vector.extract_strided_slice %58 {offsets = [2, 0, 0], sizes = [8, 8, 8], strides = [1, 1, 1]} : vector<10x10x8xbf16> to vector<8x8x8xbf16>
    %96 = vector.shape_cast %95 : vector<8x8x8xbf16> to vector<64x8xbf16>
    %c15 = arith.constant 15 : index
    %c0_55 = arith.constant 0 : index
    %c0_56 = arith.constant 0 : index
    %97 = vector.load %arg5[%c15, %c0_55, %c0_56] : memref<27x8x8xbf16, #tpu.memory_space<vmem>>, vector<1x8x8xbf16>
    %98 = vector.shape_cast %97 : vector<1x8x8xbf16> to vector<8x8xbf16>
    %cst_57 = arith.constant dense<0.000000e+00> : vector<64x8xf32>
    %99 = tpu.matmul %96, %98, %cst_57 {dimension_numbers = #tpu.dot_dimension_numbers<[1], [0], [0], [1], [0, 0, 1, 1], [], []>} : vector<64x8xbf16>, vector<8x8xbf16>, vector<64x8xf32> -> vector<64x8xf32>
    %100 = arith.addf %94, %99 : vector<64x8xf32>
    %101 = vector.extract_strided_slice %58 {offsets = [2, 1, 0], sizes = [8, 8, 8], strides = [1, 1, 1]} : vector<10x10x8xbf16> to vector<8x8x8xbf16>
    %102 = vector.shape_cast %101 : vector<8x8x8xbf16> to vector<64x8xbf16>
    %c16 = arith.constant 16 : index
    %c0_58 = arith.constant 0 : index
    %c0_59 = arith.constant 0 : index
    %103 = vector.load %arg5[%c16, %c0_58, %c0_59] : memref<27x8x8xbf16, #tpu.memory_space<vmem>>, vector<1x8x8xbf16>
    %104 = vector.shape_cast %103 : vector<1x8x8xbf16> to vector<8x8xbf16>
    %cst_60 = arith.constant dense<0.000000e+00> : vector<64x8xf32>
    %105 = tpu.matmul %102, %104, %cst_60 {dimension_numbers = #tpu.dot_dimension_numbers<[1], [0], [0], [1], [0, 0, 1, 1], [], []>} : vector<64x8xbf16>, vector<8x8xbf16>, vector<64x8xf32> -> vector<64x8xf32>
    %106 = arith.addf %100, %105 : vector<64x8xf32>
    %107 = vector.extract_strided_slice %58 {offsets = [2, 2, 0], sizes = [8, 8, 8], strides = [1, 1, 1]} : vector<10x10x8xbf16> to vector<8x8x8xbf16>
    %108 = vector.shape_cast %107 : vector<8x8x8xbf16> to vector<64x8xbf16>
    %c17 = arith.constant 17 : index
    %c0_61 = arith.constant 0 : index
    %c0_62 = arith.constant 0 : index
    %109 = vector.load %arg5[%c17, %c0_61, %c0_62] : memref<27x8x8xbf16, #tpu.memory_space<vmem>>, vector<1x8x8xbf16>
    %110 = vector.shape_cast %109 : vector<1x8x8xbf16> to vector<8x8xbf16>
    %cst_63 = arith.constant dense<0.000000e+00> : vector<64x8xf32>
    %111 = tpu.matmul %108, %110, %cst_63 {dimension_numbers = #tpu.dot_dimension_numbers<[1], [0], [0], [1], [0, 0, 1, 1], [], []>} : vector<64x8xbf16>, vector<8x8xbf16>, vector<64x8xf32> -> vector<64x8xf32>
    %112 = arith.addf %106, %111 : vector<64x8xf32>
    %c0_64 = arith.constant 0 : index
    %c0_65 = arith.constant 0 : index
    %c0_66 = arith.constant 0 : index
    %c0_67 = arith.constant 0 : index
    %c0_68 = arith.constant 0 : index
    %113 = vector.load %arg4[%c0_64, %c0_65, %c0_66, %c0_67, %c0_68] : memref<1x1x10x10x8xbf16, #tpu.memory_space<vmem>>, vector<1x1x10x10x8xbf16>
    %114 = vector.shape_cast %113 : vector<1x1x10x10x8xbf16> to vector<10x10x8xbf16>
    %115 = vector.extract_strided_slice %114 {offsets = [0, 0, 0], sizes = [8, 8, 8], strides = [1, 1, 1]} : vector<10x10x8xbf16> to vector<8x8x8xbf16>
    %116 = vector.shape_cast %115 : vector<8x8x8xbf16> to vector<64x8xbf16>
    %c18 = arith.constant 18 : index
    %c0_69 = arith.constant 0 : index
    %c0_70 = arith.constant 0 : index
    %117 = vector.load %arg5[%c18, %c0_69, %c0_70] : memref<27x8x8xbf16, #tpu.memory_space<vmem>>, vector<1x8x8xbf16>
    %118 = vector.shape_cast %117 : vector<1x8x8xbf16> to vector<8x8xbf16>
    %cst_71 = arith.constant dense<0.000000e+00> : vector<64x8xf32>
    %119 = tpu.matmul %116, %118, %cst_71 {dimension_numbers = #tpu.dot_dimension_numbers<[1], [0], [0], [1], [0, 0, 1, 1], [], []>} : vector<64x8xbf16>, vector<8x8xbf16>, vector<64x8xf32> -> vector<64x8xf32>
    %120 = arith.addf %112, %119 : vector<64x8xf32>
    %121 = vector.extract_strided_slice %114 {offsets = [0, 1, 0], sizes = [8, 8, 8], strides = [1, 1, 1]} : vector<10x10x8xbf16> to vector<8x8x8xbf16>
    %122 = vector.shape_cast %121 : vector<8x8x8xbf16> to vector<64x8xbf16>
    %c19 = arith.constant 19 : index
    %c0_72 = arith.constant 0 : index
    %c0_73 = arith.constant 0 : index
    %123 = vector.load %arg5[%c19, %c0_72, %c0_73] : memref<27x8x8xbf16, #tpu.memory_space<vmem>>, vector<1x8x8xbf16>
    %124 = vector.shape_cast %123 : vector<1x8x8xbf16> to vector<8x8xbf16>
    %cst_74 = arith.constant dense<0.000000e+00> : vector<64x8xf32>
    %125 = tpu.matmul %122, %124, %cst_74 {dimension_numbers = #tpu.dot_dimension_numbers<[1], [0], [0], [1], [0, 0, 1, 1], [], []>} : vector<64x8xbf16>, vector<8x8xbf16>, vector<64x8xf32> -> vector<64x8xf32>
    %126 = arith.addf %120, %125 : vector<64x8xf32>
    %127 = vector.extract_strided_slice %114 {offsets = [0, 2, 0], sizes = [8, 8, 8], strides = [1, 1, 1]} : vector<10x10x8xbf16> to vector<8x8x8xbf16>
    %128 = vector.shape_cast %127 : vector<8x8x8xbf16> to vector<64x8xbf16>
    %c20 = arith.constant 20 : index
    %c0_75 = arith.constant 0 : index
    %c0_76 = arith.constant 0 : index
    %129 = vector.load %arg5[%c20, %c0_75, %c0_76] : memref<27x8x8xbf16, #tpu.memory_space<vmem>>, vector<1x8x8xbf16>
    %130 = vector.shape_cast %129 : vector<1x8x8xbf16> to vector<8x8xbf16>
    %cst_77 = arith.constant dense<0.000000e+00> : vector<64x8xf32>
    %131 = tpu.matmul %128, %130, %cst_77 {dimension_numbers = #tpu.dot_dimension_numbers<[1], [0], [0], [1], [0, 0, 1, 1], [], []>} : vector<64x8xbf16>, vector<8x8xbf16>, vector<64x8xf32> -> vector<64x8xf32>
    %132 = arith.addf %126, %131 : vector<64x8xf32>
    %133 = vector.extract_strided_slice %114 {offsets = [1, 0, 0], sizes = [8, 8, 8], strides = [1, 1, 1]} : vector<10x10x8xbf16> to vector<8x8x8xbf16>
    %134 = vector.shape_cast %133 : vector<8x8x8xbf16> to vector<64x8xbf16>
    %c21 = arith.constant 21 : index
    %c0_78 = arith.constant 0 : index
    %c0_79 = arith.constant 0 : index
    %135 = vector.load %arg5[%c21, %c0_78, %c0_79] : memref<27x8x8xbf16, #tpu.memory_space<vmem>>, vector<1x8x8xbf16>
    %136 = vector.shape_cast %135 : vector<1x8x8xbf16> to vector<8x8xbf16>
    %cst_80 = arith.constant dense<0.000000e+00> : vector<64x8xf32>
    %137 = tpu.matmul %134, %136, %cst_80 {dimension_numbers = #tpu.dot_dimension_numbers<[1], [0], [0], [1], [0, 0, 1, 1], [], []>} : vector<64x8xbf16>, vector<8x8xbf16>, vector<64x8xf32> -> vector<64x8xf32>
    %138 = arith.addf %132, %137 : vector<64x8xf32>
    %139 = vector.extract_strided_slice %114 {offsets = [1, 1, 0], sizes = [8, 8, 8], strides = [1, 1, 1]} : vector<10x10x8xbf16> to vector<8x8x8xbf16>
    %140 = vector.shape_cast %139 : vector<8x8x8xbf16> to vector<64x8xbf16>
    %c22 = arith.constant 22 : index
    %c0_81 = arith.constant 0 : index
    %c0_82 = arith.constant 0 : index
    %141 = vector.load %arg5[%c22, %c0_81, %c0_82] : memref<27x8x8xbf16, #tpu.memory_space<vmem>>, vector<1x8x8xbf16>
    %142 = vector.shape_cast %141 : vector<1x8x8xbf16> to vector<8x8xbf16>
    %cst_83 = arith.constant dense<0.000000e+00> : vector<64x8xf32>
    %143 = tpu.matmul %140, %142, %cst_83 {dimension_numbers = #tpu.dot_dimension_numbers<[1], [0], [0], [1], [0, 0, 1, 1], [], []>} : vector<64x8xbf16>, vector<8x8xbf16>, vector<64x8xf32> -> vector<64x8xf32>
    %144 = arith.addf %138, %143 : vector<64x8xf32>
    %145 = vector.extract_strided_slice %114 {offsets = [1, 2, 0], sizes = [8, 8, 8], strides = [1, 1, 1]} : vector<10x10x8xbf16> to vector<8x8x8xbf16>
    %146 = vector.shape_cast %145 : vector<8x8x8xbf16> to vector<64x8xbf16>
    %c23 = arith.constant 23 : index
    %c0_84 = arith.constant 0 : index
    %c0_85 = arith.constant 0 : index
    %147 = vector.load %arg5[%c23, %c0_84, %c0_85] : memref<27x8x8xbf16, #tpu.memory_space<vmem>>, vector<1x8x8xbf16>
    %148 = vector.shape_cast %147 : vector<1x8x8xbf16> to vector<8x8xbf16>
    %cst_86 = arith.constant dense<0.000000e+00> : vector<64x8xf32>
    %149 = tpu.matmul %146, %148, %cst_86 {dimension_numbers = #tpu.dot_dimension_numbers<[1], [0], [0], [1], [0, 0, 1, 1], [], []>} : vector<64x8xbf16>, vector<8x8xbf16>, vector<64x8xf32> -> vector<64x8xf32>
    %150 = arith.addf %144, %149 : vector<64x8xf32>
    %151 = vector.extract_strided_slice %114 {offsets = [2, 0, 0], sizes = [8, 8, 8], strides = [1, 1, 1]} : vector<10x10x8xbf16> to vector<8x8x8xbf16>
    %152 = vector.shape_cast %151 : vector<8x8x8xbf16> to vector<64x8xbf16>
    %c24 = arith.constant 24 : index
    %c0_87 = arith.constant 0 : index
    %c0_88 = arith.constant 0 : index
    %153 = vector.load %arg5[%c24, %c0_87, %c0_88] : memref<27x8x8xbf16, #tpu.memory_space<vmem>>, vector<1x8x8xbf16>
    %154 = vector.shape_cast %153 : vector<1x8x8xbf16> to vector<8x8xbf16>
    %cst_89 = arith.constant dense<0.000000e+00> : vector<64x8xf32>
    %155 = tpu.matmul %152, %154, %cst_89 {dimension_numbers = #tpu.dot_dimension_numbers<[1], [0], [0], [1], [0, 0, 1, 1], [], []>} : vector<64x8xbf16>, vector<8x8xbf16>, vector<64x8xf32> -> vector<64x8xf32>
    %156 = arith.addf %150, %155 : vector<64x8xf32>
    %157 = vector.extract_strided_slice %114 {offsets = [2, 1, 0], sizes = [8, 8, 8], strides = [1, 1, 1]} : vector<10x10x8xbf16> to vector<8x8x8xbf16>
    %158 = vector.shape_cast %157 : vector<8x8x8xbf16> to vector<64x8xbf16>
    %c25 = arith.constant 25 : index
    %c0_90 = arith.constant 0 : index
    %c0_91 = arith.constant 0 : index
    %159 = vector.load %arg5[%c25, %c0_90, %c0_91] : memref<27x8x8xbf16, #tpu.memory_space<vmem>>, vector<1x8x8xbf16>
    %160 = vector.shape_cast %159 : vector<1x8x8xbf16> to vector<8x8xbf16>
    %cst_92 = arith.constant dense<0.000000e+00> : vector<64x8xf32>
    %161 = tpu.matmul %158, %160, %cst_92 {dimension_numbers = #tpu.dot_dimension_numbers<[1], [0], [0], [1], [0, 0, 1, 1], [], []>} : vector<64x8xbf16>, vector<8x8xbf16>, vector<64x8xf32> -> vector<64x8xf32>
    %162 = arith.addf %156, %161 : vector<64x8xf32>
    %163 = vector.extract_strided_slice %114 {offsets = [2, 2, 0], sizes = [8, 8, 8], strides = [1, 1, 1]} : vector<10x10x8xbf16> to vector<8x8x8xbf16>
    %164 = vector.shape_cast %163 : vector<8x8x8xbf16> to vector<64x8xbf16>
    %c26 = arith.constant 26 : index
    %c0_93 = arith.constant 0 : index
    %c0_94 = arith.constant 0 : index
    %165 = vector.load %arg5[%c26, %c0_93, %c0_94] : memref<27x8x8xbf16, #tpu.memory_space<vmem>>, vector<1x8x8xbf16>
    %166 = vector.shape_cast %165 : vector<1x8x8xbf16> to vector<8x8xbf16>
    %cst_95 = arith.constant dense<0.000000e+00> : vector<64x8xf32>
    %167 = tpu.matmul %164, %166, %cst_95 {dimension_numbers = #tpu.dot_dimension_numbers<[1], [0], [0], [1], [0, 0, 1, 1], [], []>} : vector<64x8xbf16>, vector<8x8xbf16>, vector<64x8xf32> -> vector<64x8xf32>
    %168 = arith.addf %162, %167 : vector<64x8xf32>
    %c0_96 = arith.constant 0 : index
    %c0_97 = arith.constant 0 : index
    %c0_98 = arith.constant 0 : index
    %c0_99 = arith.constant 0 : index
    %169 = vector.load %arg6[%c0_96, %c0_97, %c0_98, %c0_99] : memref<1x1x64x8xf32, #tpu.memory_space<vmem>>, vector<1x1x64x8xf32>
    %170 = vector.shape_cast %169 : vector<1x1x64x8xf32> to vector<64x8xf32>
    %171 = vector.shape_cast %168 : vector<64x8xf32> to vector<1x1x64x8xf32>
    tpu.vector_store %arg6[%c0_96, %c0_97, %c0_98, %c0_99], %171 {strides = array<i32>} : memref<1x1x64x8xf32, #tpu.memory_space<vmem>>, vector<1x1x64x8xf32>,
    %cst_100 = arith.constant dense<0.000000e+00> : vector<8xf32>
    %172 = vector.multi_reduction <add>, %168, %cst_100 [0] : vector<64x8xf32> to vector<8xf32>
    %173 = vector.shape_cast %172 : vector<8xf32> to vector<1x8xf32>
    %174 = arith.mulf %168, %168 : vector<64x8xf32>
    %cst_101 = arith.constant dense<0.000000e+00> : vector<8xf32>
    %175 = vector.multi_reduction <add>, %174, %cst_101 [0] : vector<64x8xf32> to vector<8xf32>
    %176 = vector.shape_cast %175 : vector<8xf32> to vector<1x8xf32>
    %c0_i32 = arith.constant 0 : i32
    %177 = arith.cmpi eq, %arg1, %c0_i32 : i32
    %178 = arith.extui %177 : i1 to i32
    %c0_i32_102 = arith.constant 0 : i32
    %179 = arith.cmpi ne, %178, %c0_i32_102 : i32
    scf.if %179 {
      %cst_109 = arith.constant 0.000000e+00 : f32
      %187 = vector.broadcast %cst_109 : f32 to vector<2x8xf32>
      %c0_110 = arith.constant 0 : index
      %c0_111 = arith.constant 0 : index
      %c0_112 = arith.constant 0 : index
      %188 = vector.load %arg7[%c0_110, %c0_111, %c0_112] : memref<1x2x8xf32, #tpu.memory_space<vmem>>, vector<1x2x8xf32>
      %189 = vector.shape_cast %188 : vector<1x2x8xf32> to vector<2x8xf32>
      %190 = vector.shape_cast %187 : vector<2x8xf32> to vector<1x2x8xf32>
      tpu.vector_store %arg7[%c0_110, %c0_111, %c0_112], %190 {strides = array<i32>} : memref<1x2x8xf32, #tpu.memory_space<vmem>>, vector<1x2x8xf32>,
    } else {
    }
    %c0_103 = arith.constant 0 : index
    %c0_104 = arith.constant 0 : index
    %c0_105 = arith.constant 0 : index
    %180 = vector.load %arg7[%c0_103, %c0_104, %c0_105] : memref<1x2x8xf32, #tpu.memory_space<vmem>>, vector<1x2x8xf32>
    %181 = vector.shape_cast %180 : vector<1x2x8xf32> to vector<2x8xf32>
    %182 = tpu.concatenate %173, %176 in 0 : vector<1x8xf32>, vector<1x8xf32> -> vector<2x8xf32>
    %183 = arith.addf %181, %182 : vector<2x8xf32>
    %c0_106 = arith.constant 0 : index
    %c0_107 = arith.constant 0 : index
    %c0_108 = arith.constant 0 : index
    %184 = vector.load %arg7[%c0_106, %c0_107, %c0_108] : memref<1x2x8xf32, #tpu.memory_space<vmem>>, vector<1x2x8xf32>
    %185 = vector.shape_cast %184 : vector<1x2x8xf32> to vector<2x8xf32>
    %186 = vector.shape_cast %183 : vector<2x8xf32> to vector<1x2x8xf32>
    tpu.vector_store %arg7[%c0_106, %c0_107, %c0_108], %186 {strides = array<i32>} : memref<1x2x8xf32, #tpu.memory_space<vmem>>, vector<1x2x8xf32>,
    return
  }
  func.func @transform_0(%arg0: i32, %arg1: i32) -> (i32, i32, i32, i32, i32) {
    %c0_i32 = arith.constant 0 : i32
    %c0_i32_0 = arith.constant 0 : i32
    %c0_i32_1 = arith.constant 0 : i32
    %c0_i32_2 = arith.constant 0 : i32
    return %arg0, %arg1, %c0_i32, %c0_i32_0, %c0_i32_1 : i32, i32, i32, i32, i32
  }
  func.func @transform_1(%arg0: i32, %arg1: i32) -> (i32, i32, i32, i32, i32) {
    %c1_i32 = arith.constant 1 : i32
    %0 = arith.addi %arg1, %c1_i32 : i32
    %c0_i32 = arith.constant 0 : i32
    %c0_i32_0 = arith.constant 0 : i32
    %c0_i32_1 = arith.constant 0 : i32
    %c0_i32_2 = arith.constant 0 : i32
    return %arg0, %0, %c0_i32, %c0_i32_0, %c0_i32_1 : i32, i32, i32, i32, i32
  }
  func.func @transform_2(%arg0: i32, %arg1: i32) -> (i32, i32, i32, i32, i32) {
    %c2_i32 = arith.constant 2 : i32
    %0 = arith.addi %arg1, %c2_i32 : i32
    %c0_i32 = arith.constant 0 : i32
    %c0_i32_0 = arith.constant 0 : i32
    %c0_i32_1 = arith.constant 0 : i32
    %c0_i32_2 = arith.constant 0 : i32
    return %arg0, %0, %c0_i32, %c0_i32_0, %c0_i32_1 : i32, i32, i32, i32, i32
  }
  func.func @transform_3(%arg0: i32, %arg1: i32) -> (i32, i32, i32) {
    %c0_i32 = arith.constant 0 : i32
    %c0_i32_0 = arith.constant 0 : i32
    %c0_i32_1 = arith.constant 0 : i32
    %c0_i32_2 = arith.constant 0 : i32
    return %c0_i32, %c0_i32_0, %c0_i32_1 : i32, i32, i32
  }
  func.func @transform_4(%arg0: i32, %arg1: i32) -> (i32, i32, i32, i32) {
    %c0_i32 = arith.constant 0 : i32
    %c0_i32_0 = arith.constant 0 : i32
    %c0_i32_1 = arith.constant 0 : i32
    return %arg0, %arg1, %c0_i32, %c0_i32_0 : i32, i32, i32, i32
  }
  func.func @transform_5(%arg0: i32, %arg1: i32) -> (i32, i32, i32) {
    %c0_i32 = arith.constant 0 : i32
    %c0_i32_0 = arith.constant 0 : i32
    %c0_i32_1 = arith.constant 0 : i32
    return %arg0, %c0_i32, %c0_i32_0 : i32, i32, i32
  }
}

module attributes {stable_mosaic.version = 11 : i64} {
  func.func @_bn_relu_kernel(%arg0: i32, %arg1: memref<64x128xf32, #tpu.memory_space<vmem>>, %arg2: memref<1x128xf32, #tpu.memory_space<vmem>>, %arg3: memref<1x128xf32, #tpu.memory_space<vmem>>, %arg4: memref<64x128xbf16, #tpu.memory_space<vmem>>) attributes {dimension_semantics = [#tpu.dimension_semantics<parallel>], iteration_bounds = array<i64: 1>, scalar_prefetch = 0 : i64, scratch_operands = 0 : i64, tpu.core_type = #tpu.core_type<tc>, window_params = [{transform_indices = @transform_0, window_bounds = array<i64: 64, 128>}, {pipeline_mode = #tpu.pipeline_mode<synchronous>, transform_indices = @transform_1, window_bounds = array<i64: 1, 128>}, {pipeline_mode = #tpu.pipeline_mode<synchronous>, transform_indices = @transform_2, window_bounds = array<i64: 1, 128>}, {transform_indices = @transform_3, window_bounds = array<i64: 64, 128>}]} {
    %c0 = arith.constant 0 : index
    %c0_0 = arith.constant 0 : index
    %0 = vector.load %arg1[%c0, %c0_0] : memref<64x128xf32, #tpu.memory_space<vmem>>, vector<64x128xf32>
    %c0_1 = arith.constant 0 : index
    %c0_2 = arith.constant 0 : index
    %1 = vector.load %arg2[%c0_1, %c0_2] : memref<1x128xf32, #tpu.memory_space<vmem>>, vector<1x128xf32>
    %2 = vector.broadcast %1 : vector<1x128xf32> to vector<64x128xf32>
    %3 = arith.mulf %0, %2 : vector<64x128xf32>
    %c0_3 = arith.constant 0 : index
    %c0_4 = arith.constant 0 : index
    %4 = vector.load %arg3[%c0_3, %c0_4] : memref<1x128xf32, #tpu.memory_space<vmem>>, vector<1x128xf32>
    %5 = vector.broadcast %4 : vector<1x128xf32> to vector<64x128xf32>
    %6 = arith.addf %3, %5 : vector<64x128xf32>
    %cst = arith.constant 0.000000e+00 : f32
    %7 = vector.broadcast %cst : f32 to vector<64x128xf32>
    %8 = arith.maximumf %6, %7 : vector<64x128xf32>
    %9 = arith.truncf %8 : vector<64x128xf32> to vector<64x128xbf16>
    %c0_5 = arith.constant 0 : index
    %c0_6 = arith.constant 0 : index
    %10 = vector.load %arg4[%c0_5, %c0_6] : memref<64x128xbf16, #tpu.memory_space<vmem>>, vector<64x128xbf16>
    tpu.vector_store %arg4[%c0_5, %c0_6], %9 {strides = array<i32>} : memref<64x128xbf16, #tpu.memory_space<vmem>>, vector<64x128xbf16>,
    return
  }
  func.func @transform_0(%arg0: i32) -> (i32, i32) {
    %c0_i32 = arith.constant 0 : i32
    %c0_i32_0 = arith.constant 0 : i32
    return %arg0, %c0_i32 : i32, i32
  }
  func.func @transform_1(%arg0: i32) -> (i32, i32) {
    %c0_i32 = arith.constant 0 : i32
    %c0_i32_0 = arith.constant 0 : i32
    %c0_i32_1 = arith.constant 0 : i32
    return %c0_i32, %c0_i32_0 : i32, i32
  }
  func.func @transform_2(%arg0: i32) -> (i32, i32) {
    %c0_i32 = arith.constant 0 : i32
    %c0_i32_0 = arith.constant 0 : i32
    %c0_i32_1 = arith.constant 0 : i32
    return %c0_i32, %c0_i32_0 : i32, i32
  }
  func.func @transform_3(%arg0: i32) -> (i32, i32) {
    %c0_i32 = arith.constant 0 : i32
    %c0_i32_0 = arith.constant 0 : i32
    return %arg0, %c0_i32 : i32, i32
  }
}

module attributes {stable_mosaic.version = 11 : i64} {
  func.func @_bn_add_relu_kernel(%arg0: i32, %arg1: memref<64x128xf32, #tpu.memory_space<vmem>>, %arg2: memref<1x128xf32, #tpu.memory_space<vmem>>, %arg3: memref<1x128xf32, #tpu.memory_space<vmem>>, %arg4: memref<64x128xf32, #tpu.memory_space<vmem>>, %arg5: memref<64x128xf32, #tpu.memory_space<vmem>>) attributes {dimension_semantics = [#tpu.dimension_semantics<parallel>], iteration_bounds = array<i64: 1>, scalar_prefetch = 0 : i64, scratch_operands = 0 : i64, tpu.core_type = #tpu.core_type<tc>, window_params = [{transform_indices = @transform_0, window_bounds = array<i64: 64, 128>}, {pipeline_mode = #tpu.pipeline_mode<synchronous>, transform_indices = @transform_1, window_bounds = array<i64: 1, 128>}, {pipeline_mode = #tpu.pipeline_mode<synchronous>, transform_indices = @transform_2, window_bounds = array<i64: 1, 128>}, {transform_indices = @transform_3, window_bounds = array<i64: 64, 128>}, {transform_indices = @transform_4, window_bounds = array<i64: 64, 128>}]} {
    %c0 = arith.constant 0 : index
    %c0_0 = arith.constant 0 : index
    %0 = vector.load %arg1[%c0, %c0_0] : memref<64x128xf32, #tpu.memory_space<vmem>>, vector<64x128xf32>
    %c0_1 = arith.constant 0 : index
    %c0_2 = arith.constant 0 : index
    %1 = vector.load %arg2[%c0_1, %c0_2] : memref<1x128xf32, #tpu.memory_space<vmem>>, vector<1x128xf32>
    %2 = vector.broadcast %1 : vector<1x128xf32> to vector<64x128xf32>
    %3 = arith.mulf %0, %2 : vector<64x128xf32>
    %c0_3 = arith.constant 0 : index
    %c0_4 = arith.constant 0 : index
    %4 = vector.load %arg3[%c0_3, %c0_4] : memref<1x128xf32, #tpu.memory_space<vmem>>, vector<1x128xf32>
    %5 = vector.broadcast %4 : vector<1x128xf32> to vector<64x128xf32>
    %6 = arith.addf %3, %5 : vector<64x128xf32>
    %c0_5 = arith.constant 0 : index
    %c0_6 = arith.constant 0 : index
    %7 = vector.load %arg4[%c0_5, %c0_6] : memref<64x128xf32, #tpu.memory_space<vmem>>, vector<64x128xf32>
    %8 = arith.addf %6, %7 : vector<64x128xf32>
    %cst = arith.constant 0.000000e+00 : f32
    %9 = vector.broadcast %cst : f32 to vector<64x128xf32>
    %10 = arith.maximumf %8, %9 : vector<64x128xf32>
    %c0_7 = arith.constant 0 : index
    %c0_8 = arith.constant 0 : index
    %11 = vector.load %arg5[%c0_7, %c0_8] : memref<64x128xf32, #tpu.memory_space<vmem>>, vector<64x128xf32>
    tpu.vector_store %arg5[%c0_7, %c0_8], %10 {strides = array<i32>} : memref<64x128xf32, #tpu.memory_space<vmem>>, vector<64x128xf32>,
    return
  }
  func.func @transform_0(%arg0: i32) -> (i32, i32) {
    %c0_i32 = arith.constant 0 : i32
    %c0_i32_0 = arith.constant 0 : i32
    return %arg0, %c0_i32 : i32, i32
  }
  func.func @transform_1(%arg0: i32) -> (i32, i32) {
    %c0_i32 = arith.constant 0 : i32
    %c0_i32_0 = arith.constant 0 : i32
    %c0_i32_1 = arith.constant 0 : i32
    return %c0_i32, %c0_i32_0 : i32, i32
  }
  func.func @transform_2(%arg0: i32) -> (i32, i32) {
    %c0_i32 = arith.constant 0 : i32
    %c0_i32_0 = arith.constant 0 : i32
    %c0_i32_1 = arith.constant 0 : i32
    return %c0_i32, %c0_i32_0 : i32, i32
  }
  func.func @transform_3(%arg0: i32) -> (i32, i32) {
    %c0_i32 = arith.constant 0 : i32
    %c0_i32_0 = arith.constant 0 : i32
    return %arg0, %c0_i32 : i32, i32
  }
  func.func @transform_4(%arg0: i32) -> (i32, i32) {
    %c0_i32 = arith.constant 0 : i32
    %c0_i32_0 = arith.constant 0 : i32
    return %arg0, %c0_i32 : i32, i32
  }
}

</mosaic_0001>

<bundles_post_ra>
// kernel: tile.23
= control target key start
LH: loop header
LB: loop body
LE: loop exit
PB: predicated region body
PF: predicated region fallthrough
CT: control target
= control target key end

     0   :  { %s28_s0 = inlined_call_operand.vmem [shape: f32[8], index: 0, kind: input, shape index: {}]   ;;  %s29_s1 = inlined_call_operand.vmem [shape: f32[16,8], index: 1, kind: output, shape index: {}]  }
   0x1   :  { %v4_v0 = vld [vmem:[%s28_s0] ss:$0 sm:$0xff] }
   0x2   :  { %5 = vst [vmem:[%s29_s1] sm:$0xff] %v4_v0  ;;  %8 = vst [vmem:[%s29_s1 + $0x8] sm:$0xff] %v4_v0 }

// kernel: tile.24
= control target key start
LH: loop header
LB: loop body
LE: loop exit
PB: predicated region body
PF: predicated region fallthrough
CT: control target
= control target key end

     0   :  { %s133_s10 = smov 120   ;;  %s134_s11 = smov 104   ;;  %vm3_vm0 = vcmask 64512   ;;  %vm9_vm1 = vcmask 1048512   ;;  %vm15_vm2 = vcmask 982912   ;;  %vm21_vm3 = vcmask 917312   ;;  %s209_s0 = inlined_call_operand.vmem [shape: f32[16,8], index: 0, kind: input, shape index: {}]   ;;  %s210_s1 = inlined_call_operand.vmem [shape: f32[1,128], index: 1, kind: output, shape index: {}]  }
   0x1   :  { %v103_v0 = vld [vmem:[%s209_s0 + $0xf] sm:$0x1]   ;;  %v105_v1 = vld [vmem:[%s209_s0 + $0xd] sm:$0x1]   ;;  %v104_v2 = vld [vmem:[%s209_s0 + $0xe] sm:$0x1]  }
   0x2   :  { %7 = vrot.lane.b32.xlu0 %v103_v0, %s133_s10  ;;  %19 = vrot.lane.b32.xlu1 %v105_v1, %s134_s11  ;;  %v106_v3 = vld [vmem:[%s209_s0 + $0xc] sm:$0x1]   ;;  %s135_s16 = smov 112   ;;  %s136_s17 = smov 96   ;;  %v107_v4 = vld [vmem:[%s209_s0 + $0xb] sm:$0x1]  }
   0x3   :  { %v108_v5 = vld [vmem:[%s209_s0 + $0xa] sm:$0x1]   ;;  %v2_v6 = vld [vmem:[%s209_s0] sm:$0x1]   ;;  %s137_s24 = smov 88   ;;  %s138_s25 = smov 80  }
   0x4   :  { %4 = vst.msk [vmem:[#allocation0] sm:$0x1] %vm3_vm0, %v2_v6   ;;  %v109_v7 = vld [vmem:[%s209_s0 + $0x9] sm:$0x1]   ;;  %v110_v8 = vld [vmem:[%s209_s0 + $0x8] sm:$0x1]  }
   0x5   :  { %s139_s30 = smov 72   ;;  %s140_s2 = smov 64   ;;  %v111_v9 = vld [vmem:[%s209_s0 + $0x7] sm:$0x1]   ;;  %v112_v10 = vld [vmem:[%s209_s0 + $0x6] sm:$0x1]  }
   0x6   :  { %13 = vrot.lane.b32.xlu0 %v104_v2, %s135_s16  ;;  %25 = vrot.lane.b32.xlu1 %v106_v3, %s136_s17  ;;  %s141_s7 = smov 56   ;;  %s142_s8 = smov 48   ;;  %v113_v11 = vld [vmem:[%s209_s0 + $0x5] sm:$0x1]   ;;  %v114_v12 = vld [vmem:[%s209_s0 + $0x4] sm:$0x1]  }
   0x7   :  { %s143_s13 = smov 40   ;;  %s144_s14 = smov 32   ;;  %v115_v13 = vld [vmem:[%s209_s0 + $0x3] sm:$0x1]   ;;  %v116_v14 = vld [vmem:[%s209_s0 + $0x2] sm:$0x1]  }
   0x8   :  { %s145_s19 = smov 24   ;;  %s146_s20 = smov 16   ;;  %v117_v15 = vld [vmem:[%s209_s0 + $0x1] sm:$0x1]   ;;  %vm27_vm4 = vcmask 851712   ;;  %vm33_vm5 = vcmask 786112  }
   0x9   :  { %s147_s0 = smov 8   ;;  %vm39_vm6 = vcmask 720512   ;;  %vm45_vm7 = vcmask 654912   ;;  %vm51_vm8 = vcmask 589312   ;;  %vm57_vm9 = vcmask 523712  }
   0xa   :  { %31 = vrot.lane.b32.xlu0 %v107_v4, %s137_s24  ;;  %37 = vrot.lane.b32.xlu1 %v108_v5, %s138_s25  ;;  %vm63_vm10 = vcmask 458112   ;;  %vm69_vm11 = vcmask 392512   ;;  %vm75_vm12 = vcmask 326912   ;;  %vm81_vm13 = vcmask 261312  }
   0xb   :  { %vm87_vm14 = vcmask 195712   ;;  %vm93_vm15 = vcmask 130112  }
   0xe   :  { %43 = vrot.lane.b32.xlu0 %v109_v7, %s139_s30  ;;  %49 = vrot.lane.b32.xlu1 %v110_v8, %s140_s2 }
  0x12   :  { %55 = vrot.lane.b32.xlu0 %v111_v9, %s141_s7  ;;  %61 = vrot.lane.b32.xlu1 %v112_v10, %s142_s8 }
  0x16   :  { %67 = vrot.lane.b32.xlu0 %v113_v11, %s143_s13  ;;  %73 = vrot.lane.b32.xlu1 %v114_v12, %s144_s14 }
  0x1a   :  { %79 = vrot.lane.b32.xlu0 %v115_v13, %s145_s19  ;;  %85 = vrot.lane.b32.xlu1 %v116_v14, %s146_s20 }
  0x1e   :  { %91 = vrot.lane.b32.xlu0 %v117_v15, %s147_s0 }
  0x74   :  { %v8_v16 = vpop.permute.xlu0 %7   ;;  %v20_v17 = vpop.permute.xlu1 %19  }
  0x75   :  { %10 = vst.msk [vmem:[#allocation0] sm:$0x1] %vm9_vm1, %v8_v16  }
  0x78   :  { %v14_v18 = vpop.permute.xlu0 %13   ;;  %v26_v19 = vpop.permute.xlu1 %25  }
  0x79   :  { %16 = vst.msk [vmem:[#allocation0] sm:$0x1] %vm15_vm2, %v14_v18  }
  0x7a   :  { %22 = vst.msk [vmem:[#allocation0] sm:$0x1] %vm21_vm3, %v20_v17  }
  0x7b   :  { %28 = vst.msk [vmem:[#allocation0] sm:$0x1] %vm27_vm4, %v26_v19  }
  0x7c   :  { %v32_v20 = vpop.permute.xlu0 %31   ;;  %v38_v21 = vpop.permute.xlu1 %37  }
  0x7d   :  { %34 = vst.msk [vmem:[#allocation0] sm:$0x1] %vm33_vm5, %v32_v20  }
  0x7e   :  { %40 = vst.msk [vmem:[#allocation0] sm:$0x1] %vm39_vm6, %v38_v21  }
  0x80   :  { %v44_v22 = vpop.permute.xlu0 %43   ;;  %v50_v23 = vpop.permute.xlu1 %49  }
  0x81   :  { %46 = vst.msk [vmem:[#allocation0] sm:$0x1] %vm45_vm7, %v44_v22  }
  0x82   :  { %52 = vst.msk [vmem:[#allocation0] sm:$0x1] %vm51_vm8, %v50_v23  }
  0x84   :  { %v56_v24 = vpop.permute.xlu0 %55   ;;  %v62_v25 = vpop.permute.xlu1 %61  }
  0x85   :  { %58 = vst.msk [vmem:[#allocation0] sm:$0x1] %vm57_vm9, %v56_v24  }
  0x86   :  { %64 = vst.msk [vmem:[#allocation0] sm:$0x1] %vm63_vm10, %v62_v25  }
  0x88   :  { %v68_v26 = vpop.permute.xlu0 %67   ;;  %v74_v27 = vpop.permute.xlu1 %73  }
  0x89   :  { %70 = vst.msk [vmem:[#allocation0] sm:$0x1] %vm69_vm11, %v68_v26  }
  0x8a   :  { %76 = vst.msk [vmem:[#allocation0] sm:$0x1] %vm75_vm12, %v74_v27  }
  0x8c   :  { %v80_v28 = vpop.permute.xlu0 %79   ;;  %v86_v29 = vpop.permute.xlu1 %85  }
  0x8d   :  { %82 = vst.msk [vmem:[#allocation0] sm:$0x1] %vm81_vm13, %v80_v28  }
  0x8e   :  { %88 = vst.msk [vmem:[#allocation0] sm:$0x1] %vm87_vm14, %v86_v29  }
  0x90   :  { %v92_v30 = vpop.permute.xlu0 %91  }
  0x91   :  { %94 = vst.msk [vmem:[#allocation0] sm:$0x1] %vm93_vm15, %v92_v30  }
  0x98   :  { %v99_v31 = vld [vmem:[#allocation0] sm:$0x1] }
  0x99   :  { %102 = vst [vmem:[%s210_s1] sm:$0x1] %v99_v31 }

// kernel: basic_block_forward.5
= control target key start
LH: loop header
LB: loop body
LE: loop exit
PB: predicated region body
PF: predicated region fallthrough
CT: control target
= control target key end

     0   :  { %s207_s0 = inlined_call_operand.vmem [shape: f32[64,128], index: 0, kind: input, shape index: {}]   ;;  %s208_s1 = inlined_call_operand.vmem [shape: f32[1,128], index: 1, kind: input, shape index: {}]   ;;  %s209_s2 = inlined_call_operand.vmem [shape: f32[1,128], index: 2, kind: input, shape index: {}]   ;;  %s210_s3 = inlined_call_operand.vmem [shape: bf16[64,128], index: 3, kind: output, shape index: {}]  }
   0x1   :  { %v14_v0 = vld [vmem:[%s207_s0] sm:$0xff]  ;;  %v15_v1 = vld [vmem:[%s207_s0 + $0x8] sm:$0xff]  ;;  %v16_v6 = vld [vmem:[%s207_s0 + $0x10] sm:$0xff] }
   0x2   :  { %v104_v2 = vld [vmem:[%s208_s1] ss:$0 sm:$0xff]  ;;  %v17_v7 = vld [vmem:[%s207_s0 + $0x18] sm:$0xff]  ;;  %v19_v11 = vld [vmem:[%s207_s0 + $0x28] sm:$0xff] }
   0x3   :  { %v29_v3 = vmul.f32 %v104_v2, %v14_v0  ;;  %v30_v4 = vmul.f32 %v104_v2, %v15_v1  ;;  %v105_v5 = vld [vmem:[%s209_s2] ss:$0 sm:$0xff]  ;;  %v31_v8 = vmul.f32 %v104_v2, %v16_v6  ;;  %v32_v9 = vmul.f32 %v104_v2, %v17_v7  ;;  %v20_v12 = vld [vmem:[%s207_s0 + $0x30] sm:$0xff]  ;;  %v21_v17 = vld [vmem:[%s207_s0 + $0x38] sm:$0xff] }
   0x4   :  { %v18_v10 = vld [vmem:[%s207_s0 + $0x20] sm:$0xff]  ;;  %v34_v16 = vmul.f32 %v104_v2, %v19_v11  ;;  %v35_v20 = vmul.f32 %v104_v2, %v20_v12  ;;  %v36_v21 = vmul.f32 %v104_v2, %v21_v17 }
   0x5   :  { %v44_v13 = vadd.f32 %v105_v5, %v29_v3  ;;  %v45_v14 = vadd.f32 %v105_v5, %v30_v4  ;;  %v33_v15 = vmul.f32 %v104_v2, %v18_v10  ;;  %v46_v18 = vadd.f32 %v105_v5, %v31_v8 }
   0x6   :  { %v47_v19 = vadd.f32 %v105_v5, %v32_v9  ;;  %v49_v25 = vadd.f32 %v105_v5, %v34_v16  ;;  %v50_v28 = vadd.f32 %v105_v5, %v35_v20  ;;  %v51_v29 = vadd.f32 %v105_v5, %v36_v21 }
   0x7   :  { %v52_v22 = vmax.f32 %v44_v13, 0.0  ;;  %v53_v23 = vmax.f32 %v45_v14, 0.0  ;;  %v48_v24 = vadd.f32 %v105_v5, %v33_v15  ;;  %v54_v26 = vmax.f32 %v46_v18, 0.0 }
   0x8   :  { %v55_v27 = vmax.f32 %v47_v19, 0.0  ;;  %v57_v32 = vmax.f32 %v49_v25, 0.0  ;;  %v58_v34 = vmax.f32 %v50_v28, 0.0  ;;  %v59_v35 = vmax.f32 %v51_v29, 0.0 }
   0x9   :  { %v125_v30 = vpack.c.bf16 %v53_v23, %v52_v22  ;;  %v56_v31 = vmax.f32 %v48_v24, 0.0 }
   0xa   :  { %v130_v33 = vpack.c.bf16 %v55_v27, %v54_v26  ;;  %v140_v37 = vpack.c.bf16 %v59_v35, %v58_v34 }
   0xb   :  { %126 = vst [vmem:[%s210_s3] sm:$0xff] %v125_v30   ;;  %v135_v36 = vpack.c.bf16 %v57_v32, %v56_v31 }
   0xc   :  { %142 = vst [vmem:[%s210_s3 + $0x8] sm:$0xff] %v130_v33   ;;  %144 = vst [vmem:[%s210_s3 + $0x18] sm:$0xff] %v140_v37  }
   0xd   :  { %143 = vst [vmem:[%s210_s3 + $0x10] sm:$0xff] %v135_v36  }

// kernel: basic_block_forward.7
= control target key start
LH: loop header
LB: loop body
LE: loop exit
PB: predicated region body
PF: predicated region fallthrough
CT: control target
= control target key end

     0   :  { %s196_s0 = inlined_call_operand.vmem [shape: f32[64,128], index: 0, kind: input, shape index: {}]   ;;  %s197_s1 = inlined_call_operand.vmem [shape: f32[1,128], index: 1, kind: input, shape index: {}]   ;;  %s198_s2 = inlined_call_operand.vmem [shape: f32[1,128], index: 2, kind: input, shape index: {}]   ;;  %s199_s3 = inlined_call_operand.vmem [shape: f32[64,128], index: 3, kind: input, shape index: {}]   ;;  %s200_s4 = inlined_call_operand.vmem [shape: f32[64,128], index: 4, kind: output, shape index: {}]  }
   0x1   :  { %v17_v0 = vld [vmem:[%s196_s0] sm:$0xff]  ;;  %v18_v4 = vld [vmem:[%s196_s0 + $0x8] sm:$0xff]  ;;  %v19_v7 = vld [vmem:[%s196_s0 + $0x10] sm:$0xff] }
   0x2   :  { %v91_v1 = vld [vmem:[%s197_s1] ss:$0 sm:$0xff]  ;;  %v20_v8 = vld [vmem:[%s196_s0 + $0x18] sm:$0xff]  ;;  %v56_v10 = vld [vmem:[%s199_s3 + $0x8] sm:$0xff] }
   0x3   :  { %v92_v2 = vld [vmem:[%s198_s2] ss:$0 sm:$0xff]  ;;  %v32_v3 = vmul.f32 %v91_v1, %v17_v0  ;;  %v33_v6 = vmul.f32 %v91_v1, %v18_v4  ;;  %v34_v11 = vmul.f32 %v91_v1, %v19_v7  ;;  %v57_v12 = vld [vmem:[%s199_s3 + $0x10] sm:$0xff]  ;;  %v35_v13 = vmul.f32 %v91_v1, %v20_v8  ;;  %v58_v16 = vld [vmem:[%s199_s3 + $0x18] sm:$0xff] }
   0x4   :  { %v55_v5 = vld [vmem:[%s199_s3] sm:$0xff]  ;;  %v22_v18 = vld [vmem:[%s196_s0 + $0x28] sm:$0xff]  ;;  %v23_v19 = vld [vmem:[%s196_s0 + $0x30] sm:$0xff] }
   0x5   :  { %v47_v9 = vadd.f32 %v92_v2, %v32_v3  ;;  %v21_v14 = vld [vmem:[%s196_s0 + $0x20] sm:$0xff]  ;;  %v48_v15 = vadd.f32 %v92_v2, %v33_v6  ;;  %v49_v21 = vadd.f32 %v92_v2, %v34_v11  ;;  %v50_v22 = vadd.f32 %v92_v2, %v35_v13  ;;  %v24_v25 = vld [vmem:[%s196_s0 + $0x38] sm:$0xff]  ;;  %v60_v28 = vld [vmem:[%s199_s3 + $0x28] sm:$0xff] }
   0x6   :  { %v36_v17 = vmul.f32 %v91_v1, %v21_v14  ;;  %v59_v23 = vld [vmem:[%s199_s3 + $0x20] sm:$0xff]  ;;  %v37_v24 = vmul.f32 %v91_v1, %v22_v18  ;;  %v38_v29 = vmul.f32 %v91_v1, %v23_v19  ;;  %v39_v30 = vmul.f32 %v91_v1, %v24_v25  ;;  %v61_v35 = vld [vmem:[%s199_s3 + $0x30] sm:$0xff]  ;;  %v62_v36 = vld [vmem:[%s199_s3 + $0x38] sm:$0xff] }
   0x7   :  { %v63_v20 = vadd.f32 %v55_v5, %v47_v9  ;;  %v64_v26 = vadd.f32 %v56_v10, %v48_v15  ;;  %v65_v32 = vadd.f32 %v57_v12, %v49_v21  ;;  %v66_v33 = vadd.f32 %v58_v16, %v50_v22 }
   0x8   :  { %v51_v27 = vadd.f32 %v92_v2, %v36_v17  ;;  %v52_v34 = vadd.f32 %v92_v2, %v37_v24  ;;  %v53_v39 = vadd.f32 %v92_v2, %v38_v29  ;;  %v54_v40 = vadd.f32 %v92_v2, %v39_v30 }
   0x9   :  { %v71_v31 = vmax.f32 %v63_v20, 0.0  ;;  %v72_v37 = vmax.f32 %v64_v26, 0.0  ;;  %v73_v41 = vmax.f32 %v65_v32, 0.0  ;;  %v74_v42 = vmax.f32 %v66_v33, 0.0 }
   0xa   :  { %v67_v38 = vadd.f32 %v59_v23, %v51_v27  ;;  %v68_v43 = vadd.f32 %v60_v28, %v52_v34  ;;  %v69_v45 = vadd.f32 %v61_v35, %v53_v39  ;;  %v70_v46 = vadd.f32 %v62_v36, %v54_v40 }
   0xb   :  { %79 = vst [vmem:[%s200_s4] sm:$0xff] %v71_v31  ;;  %80 = vst [vmem:[%s200_s4 + $0x8] sm:$0xff] %v72_v37 }
   0xc   :  { %v75_v44 = vmax.f32 %v67_v38, 0.0  ;;  %81 = vst [vmem:[%s200_s4 + $0x10] sm:$0xff] %v73_v41  ;;  %82 = vst [vmem:[%s200_s4 + $0x18] sm:$0xff] %v74_v42  ;;  %v76_v47 = vmax.f32 %v68_v43, 0.0  ;;  %v77_v48 = vmax.f32 %v69_v45, 0.0  ;;  %v78_v49 = vmax.f32 %v70_v46, 0.0 }
   0xe   :  { %83 = vst [vmem:[%s200_s4 + $0x20] sm:$0xff] %v75_v44  ;;  %84 = vst [vmem:[%s200_s4 + $0x28] sm:$0xff] %v76_v47 }
   0xf   :  { %85 = vst [vmem:[%s200_s4 + $0x30] sm:$0xff] %v77_v48  ;;  %86 = vst [vmem:[%s200_s4 + $0x38] sm:$0xff] %v78_v49 }

// kernel: basic_block_forward.4
= control target key start
LH: loop header
LB: loop body
LE: loop exit
PB: predicated region body
PF: predicated region fallthrough
CT: control target
= control target key end

     0   :  { %s4602_s18 = smov 0   ;;  %s4604_s19 = smov 0   ;;  %s5947_s0 = inlined_call_operand.vmem [shape: bf16[2,10,10,10,8], index: 0, kind: input, shape index: {}, may-alias: {0,1,2}]   ;;  %s5948_s1 = inlined_call_operand.vmem [shape: bf16[2,10,10,10,8], index: 1, kind: input, shape index: {}, may-alias: {0,1,2}]   ;;  %s5949_s2 = inlined_call_operand.vmem [shape: bf16[2,10,10,10,8], index: 2, kind: input, shape index: {}, may-alias: {0,1,2}]   ;;  %s5950_s3 = inlined_call_operand.vmem [shape: bf16[27,8,8], index: 3, kind: input, shape index: {}]   ;;  %s5951_s4 = inlined_call_operand.vmem [shape: f32[2,8,64,8], index: 4, kind: output, shape index: {0}]   ;;  %s5952_s5 = inlined_call_operand.vmem [shape: f32[2,2,8], index: 5, kind: output, shape index: {1}]  }
   0x1   :  { %s4606_s20 = smov 0   ;;  %s4608_s21 = smov 0  }
   0x2   :  { %s4610_s22 = smov 0  }
   0x3 LB: > { %s25_s23 = sadd.s32 1, %s4561_s20  ;;  %s28_s24 = sadd.s32 1, %s4565_s21  ;;  %s4569_s22 = sphi %s4610_s22, %s16_s22   ;;  %s4565_s21 = sphi %s4608_s21, %s5988_s21   ;;  %s4561_s20 = sphi %s4606_s20, %s5987_s20   ;;  %s4557_s19 = sphi %s4604_s19, %s5986_s19   ;;  %s4553_s18 = sphi %s4602_s18, %s5985_s18  }
   0x4   : > { %p26_p0 = scmp.ge.s32.totalorder %s25_s23, 8  ;;  %p3768_p1 = scmp.ge.s32.totalorder %s4569_s22, 1 }
   0x5   : > { %p250_p2 = scmp.lt.s32.totalorder %s4569_s22, 17 }
   0x6   : > { %s5990_s23 = smov (%p26_p0, %s25_s23), 0  ;;  %s5992_s24 = smov (!%p26_p0, %s28_s24), %s4565_s21 }
   0x7   : > { %p251_p3 = pnand %p3768_p1, %p250_p2  ;;  %p30_p4 = scmp.ge.s32.totalorder %s5992_s24, 2 }
   0x9   : > { %s5994_s24 = smov (%p30_p4, %s5992_s24), 0  ;;  %254 = sbr.rel (%p251_p3) target bundleno = 494 (0x1ee), region = 36 }
   0xe   : > { %v3776_v0 = vld [vmem:[%s5950_s3 + $0x4] sm:$0xf]  ;;  %vm518_vm0 = vcmask 1043456   ;;  %p310_p5 = scmp.lt.s32.totalorder %s4557_s19, 1  ;;  %p312_p6 = scmp.lt.s32.totalorder %s4553_s18, 9  ;;  %vm505_vm3 = vcmask 64512  }
   0xf   : > { %4432 = vmatprep.subr.msk.bf16.mxu1 %vm518_vm0, %v3776_v0  ;;  %4431 = vmatprep.subr.msk.bf16.mxu0 %vm518_vm0, %v3776_v0  ;;  %v520_v1 = vsel %vm518_vm0, %v3776_v0, 0  ;;  %v375_v2 = vld [vmem:[%s5950_s3] sm:$0xf]  ;;  %v3801_v3 = vld [vmem:[%s5950_s3 + $0x8] sm:$0xf]  ;;  %vm695_vm5 = vcmask 1042432  }
  0x10   : > { %4430 = vmatpush3.bf16.msra.mxu1 %v520_v1  ;;  %4160 = vmatpush3.bf16.msra.mxu0 %v520_v1  ;;  %s5996_s19 = smov (!%p310_p5, %s4557_s19), 1  ;;  %vm376_vm1 = vsmask.f32 3328  ;;  %vm377_vm2 = vsmask.f32 7440  ;;  %v4711_v37 = vsel %vm518_vm0, %v375_v2, 0 }
  0x11   : > { %s313_s6 = scalar_select %p312_p6, %s4553_s18, 9  ;;  %4433 = vmatprep.subr.msk.bf16.mxu1 %vm518_vm0, %v375_v2  ;;  %4434 = vmatprep.subr.msk.bf16.mxu0 %vm518_vm0, %v3801_v3  ;;  %vm4699_vm4 = vmor %vm376_vm1, %vm377_vm2  ;;  %v4714_v38 = vsel %vm518_vm0, %v3801_v3, 0  ;;  %vm696_vm6 = vcmask 1046532  }
  0x12   : > { %s4653_s7 = smul.u32 200, %s5996_s19  ;;  %s3775_s8 = sshll.u32 %s5996_s19, 1  ;;  %vm4789_vm7 = vmor %vm695_vm5, %vm696_vm6 }
  0x13   : > { %s4459_s9 = smul.u32 20, %s313_s6  ;;  %s4659_s12 = scalar_lea.vmem %s5952_s5, %s3775_s8 }
  0x14   : > { %s319_s27 = sadd.s32 1, %s4553_s18  ;;  %s330_s29 = sadd.s32 2, %s4553_s18 }
  0x15   : > { %s316_s13 = sadd.s32 %s4653_s7, %s4459_s9  ;;  %p322_p7 = scmp.lt.s32.totalorder %s319_s27, 9 }
  0x16   : > { %s3769_s14 = sshll.u32 %s316_s13, 2  ;;  %p333_p8 = scmp.lt.s32.totalorder %s330_s29, 9 }
  0x17   : > { %s4665_s17 = scalar_lea.vmem %s5947_s0, %s3769_s14  ;;  %s5998_s27 = smov (!%p322_p7, %s319_s27), 9 }
  0x18   : > { %v4668_v4 = vld [vmem:[%s4665_s17] sm:$0xf]  ;;  %v4671_v5 = vld [vmem:[%s4665_s17 + $0x4] sm:$0x1]  ;;  %v4674_v6 = vld [vmem:[%s4665_s17 + $0x8] sm:$0xf] }
  0x19   : > { %v4677_v7 = vld [vmem:[%s4665_s17 + $0xc] sm:$0x1]  ;;  %v4680_v8 = vld [vmem:[%s4665_s17 + $0x10] sm:$0xf]  ;;  %v380_v9 = vshrl.u32 %v4668_v4, 16  ;;  %v383_v10 = vshll.u32 %v4668_v4, 16  ;;  %v3785_v54 = vcombine.low %v4668_v4, %v4674_v6 }
  0x1a   : > { %v389_v11 = vshll.u32 %v4671_v5, 16  ;;  %v394_v12 = vshrl.u32 %v4674_v6, 16  ;;  %v4687_v13 = vld [vmem:[%s4665_s17 + $0x14] sm:$0x1]  ;;  %v397_v14 = vshll.u32 %v4674_v6, 16  ;;  %v403_v15 = vshll.u32 %v4677_v7, 16 }
  0x1b   : > { %v408_v16 = vshrl.u32 %v4680_v8, 16  ;;  %v411_v17 = vshll.u32 %v4680_v8, 16  ;;  %v382_v18 = vrot.slane %v380_v9, 4  ;;  %v385_v19 = vrot.slane %v383_v10, 5  ;;  %v4694_v21 = vld [vmem:[%s4665_s17 + $0x18] sm:$0xf] }
  0x1c   : > { %v396_v20 = vrot.slane %v394_v12, 4  ;;  %v399_v22 = vrot.slane %v397_v14, 5  ;;  %v391_v26 = vrot.slane %v389_v11, 5  ;;  %v417_v27 = vshll.u32 %v4687_v13, 16  ;;  %v4704_v32 = vld [vmem:[%s4665_s17 + $0x1c] sm:$0x1] }
  0x1d   : > { %v410_v23 = vrot.slane %v408_v16, 4  ;;  %v413_v24 = vrot.slane %v411_v17, 5  ;;  %v386_v25 = vor.u32 %v385_v19, %v382_v18  ;;  %v405_v30 = vrot.slane %v403_v15, 5  ;;  %v4707_v33 = vld [vmem:[%s4665_s17 + $0x20] sm:$0xf]  ;;  %s4461_s10 = smul.u32 20, %s5998_s27 }
  0x1e   : > { %v400_v29 = vor.u32 %v399_v22, %v396_v20  ;;  %v422_v34 = vshrl.u32 %v4694_v21, 16  ;;  %v419_v36 = vrot.slane %v417_v27, 5  ;;  %v4717_v41 = vld [vmem:[%s4665_s17 + $0x24] sm:$0x1]  ;;  %v425_v43 = vshll.u32 %v4694_v21, 16  ;;  %s6000_s29 = smov (!%p333_p8, %s330_s29), 9 }
  0x1f   : > { %v414_v31 = vor.u32 %v413_v24, %v410_v23  ;;  %v387_v35 = vrot.slane %v386_v25, 4  ;;  %v4723_v45 = vld [vmem:[%s4665_s17 + $0x28] sm:$0xf]  ;;  %v431_v46 = vshll.u32 %v4704_v32, 16  ;;  %v436_v47 = vshrl.u32 %v4707_v33, 16  ;;  %s326_s11 = sadd.s32 %s4461_s10, %s4653_s7  ;;  %s4462_s6 = smul.u32 20, %s6000_s29 }
  0x20   : > { %v401_v39 = vrot.slane %v400_v29, 4  ;;  %v424_v42 = vrot.slane %v422_v34, 4  ;;  %v439_v48 = vshll.u32 %v4707_v33, 16  ;;  %v700_v50 = vrot.slane %v4671_v5, 5  ;;  %v4734_v51 = vld [vmem:[%s4665_s17 + $0x2c] sm:$0x1] }
  0x21   : > { %v415_v40 = vrot.slane %v414_v31, 4  ;;  %v392_v44 = vsel %vm4699_vm4, %v387_v35, %v391_v26  ;;  %v4737_v52 = vld [vmem:[%s4665_s17 + $0x30] sm:$0xf]  ;;  %v427_v53 = vrot.slane %v425_v43, 5  ;;  %v4747_v57 = vld [vmem:[%s4665_s17 + $0x34] sm:$0x1]  ;;  %s337_s10 = sadd.s32 %s4462_s6, %s4653_s7 }
  0x22   : > { %v4730_v49 = vsel %vm4699_vm4, %v401_v39, %v405_v30  ;;  %v438_v58 = vrot.slane %v436_v47, 4  ;;  %v445_v59 = vshll.u32 %v4717_v41, 16  ;;  %v433_v61 = vrot.slane %v431_v46, 5  ;;  %v4753_v0 = vld [vmem:[%s4665_s17 + $0x38] sm:$0xf]  ;;  %s3770_s15 = sshll.u32 %s326_s11, 2 }
  0x23   : > { %v4743_v55 = vsel %vm4699_vm4, %v415_v40, %v419_v36  ;;  %v3777_v56 = vcombine.low %v392_v44, %v4730_v49  ;;  %v428_v60 = vor.u32 %v427_v53, %v424_v42  ;;  %v441_v62 = vrot.slane %v439_v48, 5  ;;  %v4760_v10 = vld [vmem:[%s4665_s17 + $0x3c] sm:$0x1]  ;;  %v3819_v43 = vld [vmem:[%s5950_s3 + $0x10] sm:$0xf]  ;;  %s4951_s26 = scalar_lea.vmem %s5948_s1, %s3770_s15  ;;  %s3771_s11 = sshll.u32 %s337_s10, 2 }
  0x24   : > { %v450_v63 = vshrl.u32 %v4723_v45, 16  ;;  %v453_v1 = vshll.u32 %v4723_v45, 16  ;;  %v459_v2 = vshll.u32 %v4734_v51, 16  ;;  %v464_v3 = vshrl.u32 %v4737_v52, 16  ;;  %s5380_s7 = scalar_lea.vmem %s5949_s2, %s3771_s11  ;;  %p343_p9 = scmp.lt.s32.totalorder %s4553_s18, 7 }
  0x25   : > { %4161 = vmatprep.mubr.msk.bf16.mxu0 %vm505_vm3, %v3777_v56  ;;  %v467_v9 = vshll.u32 %v4737_v52, 16  ;;  %v429_v11 = vrot.slane %v428_v60, 4  ;;  %v442_v12 = vor.u32 %v441_v62, %v438_v58  ;;  %v473_v15 = vshll.u32 %v4747_v57, 16  ;;  %s3773_s16 = sshll.u32 %s5996_s19, 6  ;;  %p4021_p10 = scmp.ne.s32.totalorder %s4553_s18, 0 }
  0x26   : > { %v452_v14 = vrot.slane %v450_v63, 4  ;;  %v447_v16 = vrot.slane %v445_v59, 5  ;;  %v455_v17 = vrot.slane %v453_v1, 5  ;;  %v466_v18 = vrot.slane %v464_v3, 4 }
  0x27   : > { %v469_v19 = vrot.slane %v467_v9, 5  ;;  %v4765_v20 = vsel %vm4699_vm4, %v429_v11, %v433_v61  ;;  %v443_v22 = vrot.slane %v442_v12, 4  ;;  %v461_v23 = vrot.slane %v459_v2, 5 }
  0x28   : > { %v478_v24 = vshrl.u32 %v4753_v0, 16  ;;  %v456_v25 = vor.u32 %v455_v17, %v452_v14  ;;  %v481_v27 = vshll.u32 %v4753_v0, 16  ;;  %v487_v29 = vshll.u32 %v4760_v10, 16  ;;  %v3810_v17 = vld [vmem:[%s5950_s3 + $0xc] sm:$0xf] }
  0x29   : > { %v470_v26 = vor.u32 %v469_v19, %v466_v18  ;;  %v704_v30 = vrot.slane %v4677_v7, 5  ;;  %v475_v31 = vrot.slane %v473_v15, 5  ;;  %v4773_v35 = vcombine.low %v4743_v55, %v4765_v20 }
  0x2a   : > { %v480_v34 = vrot.slane %v478_v24, 4  ;;  %v4777_v36 = vsel %vm4699_vm4, %v443_v22, %v447_v16  ;;  %v457_v39 = vrot.slane %v456_v25, 4  ;;  %v483_v42 = vrot.slane %v481_v27, 5  ;;  %v4856_v16 = vld [vmem:[%s4665_s17 + $0x40] sm:$0xf] }
  0x2b   : > { %v471_v40 = vrot.slane %v470_v26, 4  ;;  %v708_v44 = vrot.slane %v4687_v13, 5  ;;  %v489_v7 = vrot.slane %v487_v29, 5  ;;  %v712_v46 = vrot.slane %v4704_v32, 5  ;;  %4162 = vmatmul.mubr.msk.bf16.vlgmr.msra.gmra.mxu0 %vm505_vm3, %v4773_v35  ;;  %v3838_v24 = vld [vmem:[%s5950_s3 + $0x18] sm:$0xf] }
  0x2c   : > { %v716_v47 = vrot.slane %v4717_v41, 5  ;;  %v4795_v53 = vsel %vm4699_vm4, %v457_v39, %v461_v23  ;;  %v484_v56 = vor.u32 %v483_v42, %v480_v34  ;;  %v720_v13 = vrot.slane %v4734_v51, 5  ;;  %4180 = vmatpush3.bf16.msra.mxu0 %v4714_v38  ;;  %v4910_v39 = vld [vmem:[%s4665_s17 + $0x44] sm:$0x1] }
  0x2d   : > { %v3793_v32 = vrot.slane %v4668_v4, 9  ;;  %v4802_v41 = vsel %vm4699_vm4, %v471_v40, %v475_v31  ;;  %v4806_v58 = vcombine.low %v4777_v36, %v4795_v53  ;;  %v3794_v59 = vrot.slane %v4674_v6, 9  ;;  %4436 = vmatprep.subr.msk.bf16.mxu0 %vm518_vm0, %v3819_v43  ;;  %v3829_v40 = vld [vmem:[%s5950_s3 + $0x14] sm:$0xf] }
  0x2e   : > { %v3795_v60 = vrot.slane %v4680_v8, 9  ;;  %v485_v61 = vrot.slane %v484_v56, 4  ;;  %v3796_v51 = vrot.slane %v4694_v21, 9  ;;  %v3797_v62 = vrot.slane %v4707_v33, 9 }
  0x2f   : > { %v701_v38 = vsel %vm4789_vm7, %v3793_v32, %v700_v50  ;;  %4165 = vmatprep.mubr.msk.bf16.mxu1 %vm505_vm3, %v4806_v58  ;;  %v724_v63 = vrot.slane %v4747_v57, 5  ;;  %v4822_v1 = vsel %vm4789_vm7, %v3794_v59, %v704_v30  ;;  %v3798_v50 = vrot.slane %v4723_v45, 9  ;;  %v4961_v32 = vld [vmem:[%s4951_s26] sm:$0xf] }
  0x30   : > { %v4826_v5 = vsel %vm4789_vm7, %v3795_v60, %v708_v44  ;;  %v4831_v2 = vsel %vm4699_vm4, %v485_v61, %v489_v7  ;;  %v3802_v3 = vcombine.low %v701_v38, %v4822_v1  ;;  %v4836_v9 = vsel %vm4789_vm7, %v3796_v51, %v712_v46  ;;  %v3866_v51 = vld [vmem:[%s5950_s3 + $0x28] sm:$0xf] }
  0x31   : > { %v4840_v57 = vsel %vm4789_vm7, %v3797_v62, %v716_v47  ;;  %v4844_v11 = vcombine.low %v4802_v41, %v4831_v2  ;;  %v4848_v12 = vcombine.low %v4826_v5, %v4836_v9  ;;  %v962_v14 = vsel %vm518_vm0, %v3819_v43, 0  ;;  %v4987_v62 = vld [vmem:[%s4951_s26 + $0x8] sm:$0xf] }
  0x32   : > { %v4853_v15 = vsel %vm4789_vm7, %v3798_v50, %v720_v13  ;;  %4181 = vmatprep.mubr.msk.bf16.mxu0 %vm505_vm3, %v3802_v3  ;;  %v3799_v19 = vrot.slane %v4737_v52, 9  ;;  %v3800_v22 = vrot.slane %v4753_v0, 9  ;;  %v728_v23 = vrot.slane %v4760_v10, 5  ;;  %v3851_v13 = vld [vmem:[%s5950_s3 + $0x20] sm:$0xf] }
  0x33   : > { %v4865_v18 = vcombine.low %v4840_v57, %v4853_v15  ;;  %4166 = vmatmul.mubr.msk.bf16.vlgmr.msra.gmra.mxu1 %vm505_vm3, %v4844_v11  ;;  %4182 = vmatmul.mubr.msk.bf16.vlgmr.msra.gmra.mxu0 %vm505_vm3, %v4848_v12  ;;  %v929_v26 = vshrl.u32 %v4856_v16, 16  ;;  %v932_v27 = vshll.u32 %v4856_v16, 16  ;;  %v3786_v4 = vcombine.low %v4680_v8, %v4694_v21 }
  0x34   : > { %4170 = vmatpush3.bf16.msra.mxu1 %v4711_v37  ;;  %4171 = vmatprep.mubr.msk.bf16.mxu1 %vm505_vm3, %v3785_v54  ;;  %v4884_v10 = vsel %vm4789_vm7, %v3799_v19, %v724_v63  ;;  %v4888_v25 = vsel %vm4789_vm7, %v3800_v22, %v728_v23  ;;  %v4904_v54 = vcombine.low %v4707_v33, %v4723_v45  ;;  %v853_v34 = vsel %vm518_vm0, %v3810_v17, 0  ;;  %v5000_v23 = vld [vmem:[%s4951_s26 + $0xc] sm:$0x1] }
  0x35   : > { %4435 = vmatprep.subr.msk.bf16.mxu1 %vm518_vm0, %v3810_v17  ;;  %4200 = vmatpush3.bf16.msra.mxu0 %v962_v14  ;;  %v4900_v37 = vcombine.low %v4884_v10, %v4888_v25  ;;  %v931_v29 = vrot.slane %v929_v26, 4  ;;  %v934_v30 = vrot.slane %v932_v27, 5  ;;  %v3820_v31 = vcombine.low %v4730_v49, %v4743_v55  ;;  %v374_v14 = vld [vmem:[%s4665_s17 + $0x4c] sm:$0x1] }
  0x36   : > { %4185 = vmatprep.mubr.msk.bf16.mxu0 %vm505_vm3, %v4865_v18  ;;  %4438 = vmatprep.subr.msk.bf16.mxu0 %vm518_vm0, %v3838_v24  ;;  %v938_v49 = vshll.u32 %v4910_v39, 16  ;;  %v3821_v55 = vcombine.low %v4765_v20, %v4777_v36  ;;  %v4927_v43 = vcombine.low %v4737_v52, %v4753_v0  ;;  %v3811_v44 = vcombine.low %v4674_v6, %v4680_v8 }
  0x37   : > { %v935_v42 = vor.u32 %v934_v30, %v931_v29  ;;  %v3822_v47 = vcombine.low %v4795_v53, %v4802_v41  ;;  %v1146_v56 = vsel %vm518_vm0, %v3838_v24, 0  ;;  %v3812_v8 = vcombine.low %v4694_v21, %v4707_v33  ;;  %v3844_v41 = vld [vmem:[%s5950_s3 + $0x1c] sm:$0xf]  ;;  %v4970_v21 = vld [vmem:[%s4665_s17 + $0x48] sm:$0xf] }
  0x38   : > { %v940_v46 = vrot.slane %v938_v49, 5  ;;  %v3813_v36 = vcombine.low %v4723_v45, %v4737_v52  ;;  %v1062_v53 = vsel %vm518_vm0, %v3829_v40, 0  ;;  %v1537_v33 = vshrl.u32 %v4961_v32, 16  ;;  %v5013_v30 = vld [vmem:[%s4951_s26 + $0x14] sm:$0x1] }
  0x39   : > { %v936_v7 = vrot.slane %v935_v42, 4  ;;  %v1540_v45 = vshll.u32 %v4961_v32, 16  ;;  %v1222_v52 = vshrl.u32 %v4970_v21, 16  ;;  %v1225_v59 = vshll.u32 %v4970_v21, 16 }
  0x3a   : > { %v3814_v60 = vcombine.low %v4753_v0, %v4856_v16  ;;  %v3830_v61 = vcombine.low %v4822_v1, %v4826_v5  ;;  %v1331_v38 = vsel %vm518_vm0, %v3851_v13, 0  ;;  %v3828_v63 = vrot.slane %v4856_v16, 9  ;;  %v4996_v5 = vld [vmem:[%s4951_s26 + $0x10] sm:$0xf] }
  0x3b   : > { %4172 = vmatmul.mubr.msk.bf16.vlgmr.msra.gmra.mxu1 %vm505_vm3, %v3786_v4  ;;  %4186 = vmatmul.mubr.msk.bf16.gmra.mxu0 %vm505_vm3, %v4900_v37  ;;  %v4944_v6 = vsel %vm4699_vm4, %v936_v7, %v940_v46  ;;  %v1040_v50 = vrot.slane %v4910_v39, 5  ;;  %v1539_v3 = vrot.slane %v1537_v33, 4  ;;  %v1542_v0 = vrot.slane %v1540_v45, 5 }
  0x3c   : > { %4190 = vmatpush3.bf16.msra.mxu1 %v853_v34  ;;  %4175 = vmatprep.mubr.msk.bf16.mxu1 %vm505_vm3, %v4904_v54  ;;  %v3823_v20 = vcombine.low %v4831_v2, %v4944_v6  ;;  %v4992_v2 = vld [vmem:[%s4951_s26 + $0x4] sm:$0x1]  ;;  %v1224_v17 = vrot.slane %v1222_v52, 4  ;;  %v1227_v1 = vrot.slane %v1225_v59, 5  ;;  %v3850_v19 = vrot.slane %v4970_v21, 9 }
  0x3d   : > { %4201 = vmatprep.mubr.msk.bf16.mxu0 %vm505_vm3, %v3820_v31  ;;  %4437 = vmatprep.subr.msk.bf16.mxu1 %vm518_vm0, %v3829_v40  ;;  %v1321_v22 = vrot.slane %v374_v14, 5  ;;  %v1551_v24 = vshrl.u32 %v4987_v62, 16  ;;  %v1554_v26 = vshll.u32 %v4987_v62, 16  ;;  %v1243_v27 = vsel %vm518_vm0, %v3844_v41, 0 }
  0x3e   : > { %v1546_v29 = vshll.u32 %v4992_v2, 16  ;;  %v5018_v31 = vsel %vm4789_vm7, %v3828_v63, %v1040_v50  ;;  %v1543_v34 = vor.u32 %v1542_v0, %v1539_v3  ;;  %v1568_v39 = vshll.u32 %v4996_v5, 16  ;;  %v5082_v50 = vld [vmem:[%s4951_s26 + $0x48] sm:$0xf] }
  0x3f   : > { %v3831_v40 = vcombine.low %v4836_v9, %v4840_v57  ;;  %v1228_v42 = vor.u32 %v1227_v1, %v1224_v17  ;;  %v1231_v49 = vshll.u32 %v374_v14, 16  ;;  %v5033_v7 = vsel %vm4789_vm7, %v3850_v19, %v1321_v22  ;;  %v5036_v57 = vld [vmem:[%s4951_s26 + $0x1c] sm:$0x1]  ;;  %v1425_v1 = vld [vmem:[%s4951_s26 + $0x4c] sm:$0x1] }
  0x40   : > { %v1553_v46 = vrot.slane %v1551_v24, 4  ;;  %v1556_v9 = vrot.slane %v1554_v26, 5  ;;  %v1588_v63 = vshll.u32 %v5036_v57, 16  ;;  %v3932_v52 = vrot.slane %v5082_v50, 9 }
  0x41   : > { %v5068_v33 = vrot.slane %v1228_v42, 4  ;;  %v5070_v45 = vrot.slane %v1231_v49, 5  ;;  %v2285_v42 = vshll.u32 %v5082_v50, 16  ;;  %v2291_v49 = vshll.u32 %v1425_v1, 16 }
  0x42   : > { %v2381_v19 = vrot.slane %v1425_v1, 5 }
  0x43   : > { %4176 = vmatmul.mubr.msk.bf16.gmra.mxu1 %vm505_vm3, %v4927_v43  ;;  %4202 = vmatmul.mubr.msk.bf16.vlgmr.msra.gmra.mxu0 %vm505_vm3, %v3821_v55  ;;  %v1560_v55 = vshll.u32 %v5000_v23, 16 }
  0x44   : > { %4191 = vmatprep.mubr.msk.bf16.mxu1 %vm505_vm3, %v3811_v44  ;;  %4220 = vmatpush3.bf16.msra.mxu0 %v1146_v56  ;;  %v5029_v44 = vld [vmem:[%s4951_s26 + $0x18] sm:$0xf]  ;;  %v3833_v56 = vcombine.low %v4888_v25, %v5018_v31  ;;  %v5144_v1 = vsel %vm4789_vm7, %v3932_v52, %v2381_v19 }
  0x45   : > { %4205 = vmatprep.mubr.msk.bf16.mxu0 %vm505_vm3, %v3822_v47  ;;  %4440 = vmatprep.subr.msk.bf16.mxu0 %vm518_vm0, %v3851_v13  ;;  %v3832_v47 = vcombine.low %v4853_v15, %v4884_v10  ;;  %v3839_v13 = vcombine.low %v4856_v16, %v4970_v21  ;;  %v5058_v15 = vrot.slane %v1543_v34, 4  ;;  %v1579_v16 = vshrl.u32 %v5029_v44, 16  ;;  %v5066_v21 = vld [vmem:[%s4951_s26 + $0x40] sm:$0xf] }
  0x46   : > { %v5074_v59 = vrot.slane %v1560_v55, 5  ;;  %v1989_v14 = vshrl.u32 %v5066_v21, 16  ;;  %v1992_v17 = vshll.u32 %v5066_v21, 16 }
  0x47   : > { %v1581_v24 = vrot.slane %v1579_v16, 4  ;;  %v2287_v16 = vrot.slane %v2285_v42, 5 }
  0x48   : > { %v1994_v34 = vrot.slane %v1992_v17, 5  ;;  %v5119_v17 = vld [vmem:[%s4951_s26 + $0x24] sm:$0x1] }
  0x4b   : > { %4192 = vmatmul.mubr.msk.bf16.vlgmr.msra.gmra.mxu1 %vm505_vm3, %v3812_v8  ;;  %4206 = vmatmul.mubr.msk.bf16.gmra.mxu0 %vm505_vm3, %v3823_v20  ;;  %v5045_v8 = vrot.slane %v1546_v29, 5  ;;  %v5048_v20 = vld [vmem:[%s4951_s26 + $0x20] sm:$0xf]  ;;  %v1991_v29 = vrot.slane %v1989_v14, 4 }
  0x4c   : > { %4210 = vmatpush3.bf16.msra.mxu1 %v1062_v53  ;;  %4195 = vmatprep.mubr.msk.bf16.mxu1 %vm505_vm3, %v3813_v36  ;;  %v5051_v36 = vld [vmem:[%s4951_s26 + $0x28] sm:$0xf]  ;;  %v5056_v53 = vld [vmem:[%s5950_s3 + $0x24] sm:$0xf]  ;;  %v1593_v3 = vshrl.u32 %v5048_v20, 16  ;;  %v1596_v0 = vshll.u32 %v5048_v20, 16 }
  0x4d   : > { %4221 = vmatprep.mubr.msk.bf16.mxu0 %vm505_vm3, %v3786_v4  ;;  %4439 = vmatprep.subr.msk.bf16.mxu1 %vm518_vm0, %v3844_v41  ;;  %v5009_v4 = vsel %vm518_vm0, %v3866_v51, 0  ;;  %v5062_v41 = vrot.slane %v1568_v39, 5  ;;  %v1607_v26 = vshrl.u32 %v5051_v36, 16 }
  0x4f   : > { %v1609_v14 = vrot.slane %v1607_v26, 4  ;;  %v5129_v26 = vld [vmem:[%s4951_s26 + $0x2c] sm:$0x1] }
  0x50   : > { %v1616_v19 = vshll.u32 %v5129_v26, 16 }
  0x53   : > { %4196 = vmatmul.mubr.msk.bf16.gmra.mxu1 %vm505_vm3, %v3814_v60  ;;  %4222 = vmatmul.mubr.msk.bf16.vlgmr.msra.gmra.mxu0 %vm505_vm3, %v4904_v54  ;;  %v1565_v54 = vshrl.u32 %v4996_v5, 16  ;;  %v1423_v60 = vld [vmem:[%s4951_s26 + $0x44] sm:$0x1] }
  0x54   : > { %4211 = vmatprep.mubr.msk.bf16.mxu1 %vm505_vm3, %v3830_v61  ;;  %4240 = vmatpush3.bf16.msra.mxu0 %v1331_v38  ;;  %v1557_v61 = vor.u32 %v1556_v9, %v1553_v46  ;;  %v1595_v46 = vrot.slane %v1593_v3, 4  ;;  %v1598_v9 = vrot.slane %v1596_v0, 5  ;;  %v2293_v0 = vrot.slane %v2291_v49, 5 }
  0x55   : > { %4225 = vmatprep.mubr.msk.bf16.mxu0 %vm505_vm3, %v4927_v43  ;;  %4442 = vmatprep.subr.msk.bf16.mxu0 %vm518_vm0, %v3866_v51  ;;  %v1574_v43 = vshll.u32 %v5013_v30, 16  ;;  %v5060_v10 = vrot.slane %v1565_v54, 4  ;;  %v1582_v51 = vshll.u32 %v5029_v44, 16  ;;  %v1998_v54 = vshll.u32 %v1423_v60, 16 }
  0x56   : > { %v1558_v39 = vrot.slane %v1557_v61, 4  ;;  %v5116_v61 = vld [vmem:[%s5950_s3 + $0x30] sm:$0xf] }
  0x57   : > { %v5077_v38 = vrot.slane %v1574_v43, 5  ;;  %v1571_v22 = vor.u32 %v5062_v41, %v5060_v10  ;;  %v1584_v55 = vrot.slane %v1582_v51, 5  ;;  %v5107_v43 = vld [vmem:[%s4951_s26 + $0x30] sm:$0xf]  ;;  %v2100_v10 = vrot.slane %v1423_v60, 5 }
  0x58   : > { %v2000_v3 = vrot.slane %v1998_v54, 5  ;;  %v1624_v54 = vshll.u32 %v5107_v43, 16 }
  0x59   : > { %v1585_v60 = vor.u32 %v1584_v55, %v1581_v24  ;;  %v1602_v24 = vshll.u32 %v5119_v17, 16  ;;  %v1590_v55 = vrot.slane %v1588_v63, 5  ;;  %v5182_v63 = vld [vmem:[%s4951_s26 + $0x3c] sm:$0x1] }
  0x5b   : > { %4212 = vmatmul.mubr.msk.bf16.vlgmr.msra.gmra.mxu1 %vm505_vm3, %v3831_v40  ;;  %4226 = vmatmul.mubr.msk.bf16.gmra.mxu0 %vm505_vm3, %v3839_v13  ;;  %v2282_v40 = vshrl.u32 %v5082_v50, 16  ;;  %v3910_v13 = vrot.slane %v5066_v21, 9  ;;  %v1586_v49 = vrot.slane %v1585_v60, 4 }
  0x5c   : > { %4230 = vmatpush3.bf16.msra.mxu1 %v1243_v27  ;;  %4215 = vmatprep.mubr.msk.bf16.mxu1 %vm505_vm3, %v3832_v47  ;;  %v1610_v27 = vshll.u32 %v5051_v36, 16  ;;  %v5110_v47 = vld [vmem:[%s4951_s26 + $0x38] sm:$0xf] }
  0x5d   : > { %4241 = vmatprep.mubr.msk.bf16.mxu0 %vm505_vm3, %v4848_v12  ;;  %4441 = vmatprep.subr.msk.bf16.mxu1 %vm518_vm0, %v5056_v53  ;;  %v1995_v12 = vor.u32 %v1994_v34, %v1991_v29  ;;  %v2284_v41 = vrot.slane %v2282_v40, 4  ;;  %v1635_v40 = vshrl.u32 %v5110_v47, 16  ;;  %v1638_v25 = vshll.u32 %v5110_v47, 16 }
  0x5e   : > { %v1612_v51 = vrot.slane %v1610_v27, 5  ;;  %v1621_v27 = vshrl.u32 %v5107_v43, 16  ;;  %v5204_v60 = vsel %vm4699_vm4, %v1586_v49, %v1590_v55  ;;  %v5262_v55 = vcombine.low %v5048_v20, %v5051_v36 }
  0x5f   : > { %v1996_v29 = vrot.slane %v1995_v12, 4  ;;  %v2288_v34 = vor.u32 %v2287_v16, %v2284_v41  ;;  %v1626_v12 = vrot.slane %v1624_v54, 5  ;;  %v1461_v41 = vsel %vm518_vm0, %v5056_v53, 0 }
  0x60   : > { %v1613_v52 = vor.u32 %v1612_v51, %v1609_v14  ;;  %v5179_v14 = vld [vmem:[%s4951_s26 + $0x34] sm:$0x1]  ;;  %v3883_v51 = vld [vmem:[%s5950_s3 + $0x2c] sm:$0xf]  ;;  %v5958_v53 = vcombine.low %v5018_v31, %v5033_v7  ;;  %v1644_v31 = vshll.u32 %v5182_v63, 16 }
  0x61   : > { %v1817_v49 = vsel %vm518_vm0, %v3883_v51, 0 }
  0x63   : > { %4216 = vmatmul.mubr.msk.bf16.gmra.mxu1 %vm505_vm3, %v3833_v56  ;;  %4242 = vmatmul.mubr.msk.bf16.vlgmr.msra.gmra.mxu0 %vm505_vm3, %v4865_v18  ;;  %v5140_v56 = vsel %vm4789_vm7, %v3910_v13, %v2100_v10  ;;  %v2289_v18 = vrot.slane %v2288_v34, 4  ;;  %v1637_v13 = vrot.slane %v1635_v40, 4  ;;  %v1640_v10 = vrot.slane %v1638_v25, 5 }
  0x64   : > { %4231 = vmatprep.mubr.msk.bf16.mxu1 %vm505_vm3, %v4773_v35  ;;  %4260 = vmatpush3.bf16.msra.mxu0 %v5009_v4  ;;  %v5151_v35 = vsel %vm4699_vm4, %v1558_v39, %v5074_v59  ;;  %v1599_v4 = vor.u32 %v1598_v9, %v1595_v46  ;;  %v3934_v42 = vcombine.low %v5140_v56, %v5144_v1  ;;  %v1572_v39 = vrot.slane %v1571_v22, 4 }
  0x65   : > { %4245 = vmatprep.mubr.msk.bf16.mxu0 %vm505_vm3, %v4900_v37  ;;  %4444 = vmatprep.subr.msk.bf16.mxu0 %vm518_vm0, %v5116_v61  ;;  %v5161_v37 = vsel %vm4699_vm4, %v1996_v29, %v2000_v3  ;;  %v2294_v59 = vsel %vm4699_vm4, %v2289_v18, %v2293_v0  ;;  %v1623_v9 = vrot.slane %v1621_v27, 4  ;;  %v5957_v22 = vsel %vm4699_vm4, %v5058_v15, %v5045_v8 }
  0x66   : > { %v5168_v46 = vcombine.low %v5161_v37, %v2294_v59  ;;  %v3867_v16 = vcombine.low %v5957_v22, %v5151_v35  ;;  %v1600_v3 = vrot.slane %v1599_v4, 4  ;;  %v1604_v0 = vrot.slane %v1602_v24, 5  ;;  %v3901_v22 = vld [vmem:[%s5950_s3 + $0x34] sm:$0xf] }
  0x67   : > { %v1614_v29 = vrot.slane %v1613_v52, 4  ;;  %v1618_v34 = vrot.slane %v1616_v19, 5  ;;  %v1234_v8 = vsel %vm4699_vm4, %v5068_v33, %v5070_v45  ;;  %v5200_v15 = vsel %vm4699_vm4, %v1572_v39, %v5077_v38 }
  0x68   : > { %v1630_v33 = vshll.u32 %v5179_v14, 16  ;;  %v1641_v45 = vor.u32 %v1640_v10, %v1637_v13  ;;  %v5214_v7 = vsel %vm4699_vm4, %v1600_v3, %v1604_v0  ;;  %v3858_v27 = vcombine.low %v4961_v32, %v4987_v62 }
  0x69   : > { %v5218_v38 = vsel %vm4699_vm4, %v1614_v29, %v1618_v34  ;;  %v5225_v54 = vcombine.low %v5200_v15, %v5204_v60  ;;  %v1646_v4 = vrot.slane %v1644_v31, 5  ;;  %v1913_v24 = vsel %vm518_vm0, %v5116_v61, 0 }
  0x6a   : > { %v1632_v25 = vrot.slane %v1630_v33, 5  ;;  %v1642_v18 = vrot.slane %v1641_v45, 4  ;;  %v5231_v52 = vcombine.low %v5214_v7, %v5218_v38  ;;  %v5253_v59 = vcombine.low %v4996_v5, %v5029_v44 }
  0x6b   : > { %4232 = vmatmul.mubr.msk.bf16.vlgmr.msra.gmra.mxu1 %vm505_vm3, %v4806_v58  ;;  %4246 = vmatmul.mubr.msk.bf16.gmra.mxu0 %vm505_vm3, %v5958_v53  ;;  %v1627_v58 = vor.u32 %v1626_v12, %v1623_v9  ;;  %v3875_v9 = vrot.slane %v4961_v32, 9  ;;  %v1760_v12 = vrot.slane %v4992_v2, 5  ;;  %v3876_v13 = vrot.slane %v4987_v62, 9 }
  0x6c   : > { %4250 = vmatpush3.bf16.msra.mxu1 %v1461_v41  ;;  %4235 = vmatprep.mubr.msk.bf16.mxu1 %vm505_vm3, %v4844_v11  ;;  %v3845_v11 = vcombine.low %v4944_v6, %v1234_v8  ;;  %v3911_v6 = vld [vmem:[%s5950_s3 + $0x38] sm:$0xf]  ;;  %v5246_v61 = vsel %vm4699_vm4, %v1642_v18, %v1646_v4  ;;  %v1764_v10 = vrot.slane %v5000_v23, 5  ;;  %v3893_v41 = vcombine.low %v4987_v62, %v4996_v5  ;;  %v3920_v4 = vld [vmem:[%s5950_s3 + $0x3c] sm:$0xf] }
  0x6d   : > { %4261 = vmatprep.mubr.msk.bf16.mxu0 %vm505_vm3, %v3867_v16  ;;  %4443 = vmatprep.subr.msk.bf16.mxu1 %vm518_vm0, %v3883_v51  ;;  %v1628_v40 = vrot.slane %v1627_v58, 4  ;;  %v1761_v32 = vsel %vm4789_vm7, %v3875_v9, %v1760_v12  ;;  %v5287_v2 = vcombine.low %v5107_v43, %v5110_v47  ;;  %v3877_v23 = vrot.slane %v4996_v5, 9  ;;  %v3939_v9 = vld [vmem:[%s5950_s3 + $0x48] sm:$0xf] }
  0x6e   : > { %v1765_v62 = vsel %vm4789_vm7, %v3876_v13, %v1764_v10  ;;  %v1768_v16 = vrot.slane %v5013_v30, 5  ;;  %v3878_v51 = vrot.slane %v5029_v44, 9  ;;  %v3894_v3 = vcombine.low %v5029_v44, %v5048_v20  ;;  %v3926_v44 = vld [vmem:[%s5950_s3 + $0x40] sm:$0xf]  ;;  %v3933_v10 = vld [vmem:[%s5950_s3 + $0x44] sm:$0xf] }
  0x6f   : > { %v5242_v19 = vsel %vm4699_vm4, %v1628_v40, %v1632_v25  ;;  %v3884_v0 = vcombine.low %v1761_v32, %v1765_v62  ;;  %v1772_v29 = vrot.slane %v5036_v57, 5  ;;  %v2122_v34 = vsel %vm518_vm0, %v3911_v6, 0 }
  0x70   : > { %v5257_v39 = vcombine.low %v5242_v19, %v5246_v61  ;;  %v3879_v8 = vrot.slane %v5048_v20, 9  ;;  %v1776_v53 = vrot.slane %v5119_v17, 5  ;;  %v3880_v58 = vrot.slane %v5051_v36, 9 }
  0x71   : > { %v1780_v5 = vrot.slane %v5129_v26, 5  ;;  %v3895_v30 = vcombine.low %v5051_v36, %v5107_v43  ;;  %v1769_v57 = vsel %vm4789_vm7, %v3877_v23, %v1768_v16  ;;  %v1773_v20 = vsel %vm4789_vm7, %v3878_v51, %v1772_v29  ;;  %v2467_v23 = vld [vmem:[%s5380_s7 + $0x4] sm:$0x1]  ;;  %v2469_v16 = vld [vmem:[%s5380_s7 + $0xc] sm:$0x1] }
  0x72   : > { %v1777_v36 = vsel %vm4789_vm7, %v3879_v8, %v1776_v53  ;;  %v5319_v26 = vcombine.low %v1769_v57, %v1773_v20  ;;  %v3881_v33 = vrot.slane %v5107_v43, 9  ;;  %v3896_v45 = vcombine.low %v5110_v47, %v5066_v21  ;;  %v5417_v29 = vld [vmem:[%s5380_s7 + $0x18] sm:$0xf] }
  0x73   : > { %4236 = vmatmul.mubr.msk.bf16.gmra.mxu1 %vm505_vm3, %v3845_v11  ;;  %4262 = vmatmul.mubr.msk.bf16.vlgmr.msra.gmra.mxu0 %vm505_vm3, %v5225_v54  ;;  %v1781_v17 = vsel %vm4789_vm7, %v3880_v58, %v1780_v5  ;;  %v1784_v11 = vrot.slane %v5179_v14, 5  ;;  %v1788_v40 = vrot.slane %v5182_v63, 5  ;;  %v2022_v25 = vsel %vm518_vm0, %v3901_v22, 0 }
  0x74   : > { %4251 = vmatprep.mubr.msk.bf16.mxu1 %vm505_vm3, %v3858_v27  ;;  %4280 = vmatpush3.bf16.msra.mxu0 %v1913_v24  ;;  %v5324_v31 = vcombine.low %v1777_v36, %v1781_v17  ;;  %v3882_v27 = vrot.slane %v5110_v47, 9  ;;  %v3912_v18 = vcombine.low %v1765_v62, %v1769_v57  ;;  %v3913_v14 = vcombine.low %v1773_v20, %v1777_v36 }
  0x75   : > { %4265 = vmatprep.mubr.msk.bf16.mxu0 %vm505_vm3, %v5231_v52  ;;  %4446 = vmatprep.subr.msk.bf16.mxu0 %vm518_vm0, %v3911_v6  ;;  %v1785_v43 = vsel %vm4789_vm7, %v3881_v33, %v1784_v11  ;;  %v3902_v24 = vcombine.low %v5151_v35, %v5200_v15  ;;  %v2303_v6 = vsel %vm518_vm0, %v3926_v44, 0  ;;  %v3903_v35 = vcombine.low %v5204_v60, %v5214_v7 }
  0x76   : > { %v1789_v47 = vsel %vm4789_vm7, %v3882_v27, %v1788_v40  ;;  %v3904_v12 = vcombine.low %v5218_v38, %v5242_v19  ;;  %v2206_v13 = vsel %vm518_vm0, %v3920_v4, 0  ;;  %v3905_v60 = vcombine.low %v5246_v61, %v5161_v37  ;;  %v3965_v38 = vld [vmem:[%s5950_s3 + $0x50] sm:$0xf]  ;;  %v2466_v37 = vld [vmem:[%s5380_s7] sm:$0xf] }
  0x77   : > { %v5345_v63 = vcombine.low %v1785_v43, %v1789_v47  ;;  %v3915_v15 = vcombine.low %v1789_v47, %v5140_v56  ;;  %v2521_v7 = vsel %vm518_vm0, %v3939_v9, 0  ;;  %v2600_v19 = vshll.u32 %v2466_v37, 16  ;;  %v5395_v61 = vld [vmem:[%s5380_s7 + $0x8] sm:$0xf] }
  0x78   : > { %v3940_v62 = vcombine.low %v2466_v37, %v5395_v61  ;;  %v2606_v53 = vshll.u32 %v2467_v23, 16  ;;  %v2620_v58 = vshll.u32 %v2469_v16, 16  ;;  %v2820_v5 = vrot.slane %v2467_v23, 5  ;;  %v2477_v23 = vld [vmem:[%s5380_s7 + $0x2c] sm:$0x1] }
  0x79   : > { %v2602_v32 = vrot.slane %v2600_v19, 5  ;;  %v3921_v36 = vcombine.low %v5066_v21, %v5082_v50  ;;  %v2877_v33 = vsel %vm518_vm0, %v3965_v38, 0  ;;  %v5447_v21 = vld [vmem:[%s5380_s7 + $0x38] sm:$0xf] }
  0x7a   : > { %v2608_v40 = vrot.slane %v2606_v53, 5  ;;  %v2622_v50 = vrot.slane %v2620_v58, 5 }
  0x7b   : > { %4252 = vmatmul.mubr.msk.bf16.vlgmr.msra.gmra.mxu1 %vm505_vm3, %v5253_v59  ;;  %4266 = vmatmul.mubr.msk.bf16.gmra.mxu0 %vm505_vm3, %v5257_v39 }
  0x7c   : > { %4270 = vmatpush3.bf16.msra.mxu1 %v1817_v49  ;;  %4255 = vmatprep.mubr.msk.bf16.mxu1 %vm505_vm3, %v5262_v55  ;;  %v3914_v49 = vcombine.low %v1781_v17, %v1785_v43  ;;  %v2471_v43 = vld [vmem:[%s5380_s7 + $0x14] sm:$0x1] }
  0x7d   : > { %4281 = vmatprep.mubr.msk.bf16.mxu0 %vm505_vm3, %v3893_v41  ;;  %4445 = vmatprep.subr.msk.bf16.mxu1 %vm518_vm0, %v3901_v22  ;;  %v2611_v41 = vshrl.u32 %v5395_v61, 16 }
  0x7f   : > { %v2613_v51 = vrot.slane %v2611_v41, 4 }
  0x83   : > { %4256 = vmatmul.mubr.msk.bf16.gmra.mxu1 %vm505_vm3, %v5287_v2  ;;  %4282 = vmatmul.mubr.msk.bf16.vlgmr.msra.gmra.mxu0 %vm505_vm3, %v3894_v3 }
  0x84   : > { %4271 = vmatprep.mubr.msk.bf16.mxu1 %vm505_vm3, %v3884_v0  ;;  %4300 = vmatpush3.bf16.msra.mxu0 %v2122_v34  ;;  %v5412_v0 = vld [vmem:[%s5380_s7 + $0x10] sm:$0xf]  ;;  %v5420_v34 = vld [vmem:[%s5380_s7 + $0x20] sm:$0xf] }
  0x85   : > { %4285 = vmatprep.mubr.msk.bf16.mxu0 %vm505_vm3, %v3895_v30  ;;  %4448 = vmatprep.subr.msk.bf16.mxu0 %vm518_vm0, %v3926_v44  ;;  %v3958_v30 = vrot.slane %v5395_v61, 9  ;;  %v2824_v44 = vrot.slane %v2469_v16, 5  ;;  %v2625_v57 = vshrl.u32 %v5412_v0, 16  ;;  %v2628_v20 = vshll.u32 %v5412_v0, 16 }
  0x86   : > { %v5434_v17 = vcombine.low %v5412_v0, %v5417_v29  ;;  %v2653_v47 = vshrl.u32 %v5420_v34, 16 }
  0x88   : > { %v2655_v41 = vrot.slane %v2653_v47, 4  ;;  %v2695_v47 = vshrl.u32 %v5447_v21, 16 }
  0x8b   : > { %4272 = vmatmul.mubr.msk.bf16.vlgmr.msra.gmra.mxu1 %vm505_vm3, %v5319_v26  ;;  %4286 = vmatmul.mubr.msk.bf16.gmra.mxu0 %vm505_vm3, %v3896_v45  ;;  %v2639_v45 = vshrl.u32 %v5417_v29, 16 }
  0x8c   : > { %4290 = vmatpush3.bf16.msra.mxu1 %v2022_v25  ;;  %4275 = vmatprep.mubr.msk.bf16.mxu1 %vm505_vm3, %v5324_v31  ;;  %v2642_v25 = vshll.u32 %v5417_v29, 16 }
  0x8d   : > { %4301 = vmatprep.mubr.msk.bf16.mxu0 %vm505_vm3, %v3912_v18  ;;  %4447 = vmatprep.subr.msk.bf16.mxu1 %vm518_vm0, %v3920_v4  ;;  %v5444_v18 = vld [vmem:[%s5380_s7 + $0x30] sm:$0xf] }
  0x93   : > { %4276 = vmatmul.mubr.msk.bf16.gmra.mxu1 %vm505_vm3, %v5345_v63  ;;  %4302 = vmatmul.mubr.msk.bf16.vlgmr.msra.gmra.mxu0 %vm505_vm3, %v3913_v14  ;;  %v2656_v14 = vshll.u32 %v5420_v34, 16 }
  0x94   : > { %4291 = vmatprep.mubr.msk.bf16.mxu1 %vm505_vm3, %v3902_v24  ;;  %4320 = vmatpush3.bf16.msra.mxu0 %v2303_v6  ;;  %v5458_v6 = vsel %vm4789_vm7, %v3958_v30, %v2824_v44  ;;  %v3961_v44 = vrot.slane %v5420_v34, 9 }
  0x95   : > { %4305 = vmatprep.mubr.msk.bf16.mxu0 %vm505_vm3, %v3914_v49  ;;  %4450 = vmatprep.subr.msk.bf16.mxu0 %vm518_vm0, %v3939_v9  ;;  %v2627_v49 = vrot.slane %v2625_v57, 4  ;;  %v2630_v9 = vrot.slane %v2628_v20, 5  ;;  %v5506_v57 = vld [vmem:[%s5950_s3 + $0x54] sm:$0xf] }
  0x9b   : > { %4292 = vmatmul.mubr.msk.bf16.vlgmr.msra.gmra.mxu1 %vm505_vm3, %v3903_v35  ;;  %4306 = vmatmul.mubr.msk.bf16.gmra.mxu0 %vm505_vm3, %v3915_v15  ;;  %v5463_v35 = vld [vmem:[%s5950_s3 + $0x58] sm:$0xf]  ;;  %v2473_v15 = vld [vmem:[%s5380_s7 + $0x1c] sm:$0x1] }
  0x9c   : > { %4310 = vmatpush3.bf16.msra.mxu1 %v2206_v13  ;;  %4295 = vmatprep.mubr.msk.bf16.mxu1 %vm505_vm3, %v3904_v12  ;;  %v2641_v12 = vrot.slane %v2639_v45, 4  ;;  %v3959_v13 = vrot.slane %v5412_v0, 9  ;;  %v2648_v16 = vshll.u32 %v2473_v15, 16  ;;  %v2681_v45 = vshrl.u32 %v5444_v18, 16 }
  0x9d   : > { %4321 = vmatprep.mubr.msk.bf16.mxu0 %vm505_vm3, %v5225_v54  ;;  %4449 = vmatprep.subr.msk.bf16.mxu1 %vm518_vm0, %v3933_v10  ;;  %v2597_v54 = vshrl.u32 %v2466_v37, 16 }
  0x9f   : > { %v2599_v22 = vrot.slane %v2597_v54, 4  ;;  %v2832_v54 = vrot.slane %v2473_v15, 5 }
  0xa1   : > { %v2603_v8 = vor.u32 %v2602_v32, %v2599_v22 }
  0xa3   : > { %4296 = vmatmul.mubr.msk.bf16.gmra.mxu1 %vm505_vm3, %v3905_v60  ;;  %4322 = vmatmul.mubr.msk.bf16.vlgmr.msra.gmra.mxu0 %vm505_vm3, %v5231_v52  ;;  %v2614_v52 = vshll.u32 %v5395_v61, 16  ;;  %v2604_v27 = vrot.slane %v2603_v8, 4  ;;  %v2631_v8 = vor.u32 %v2630_v9, %v2627_v49 }
  0xa4   : > { %4311 = vmatprep.mubr.msk.bf16.mxu1 %vm505_vm3, %v5253_v59  ;;  %4340 = vmatpush3.bf16.msra.mxu0 %v2521_v7  ;;  %v2391_v59 = vsel %vm518_vm0, %v3933_v10, 0  ;;  %v2644_v7 = vrot.slane %v2642_v25, 5 }
  0xa5   : > { %4325 = vmatprep.mubr.msk.bf16.mxu0 %vm505_vm3, %v5257_v39  ;;  %4452 = vmatprep.subr.msk.bf16.mxu0 %vm518_vm0, %v3965_v38  ;;  %v3948_v39 = vld [vmem:[%s5950_s3 + $0x4c] sm:$0xf]  ;;  %v2616_v3 = vrot.slane %v2614_v52, 5  ;;  %v2828_v38 = vrot.slane %v2471_v43, 5  ;;  %v2658_v52 = vrot.slane %v2656_v14, 5  ;;  %v2609_v22 = vsel %vm4699_vm4, %v2604_v27, %v2608_v40 }
  0xa6   : > { %v2735_v19 = vsel %vm518_vm0, %v3948_v39, 0  ;;  %v2645_v53 = vor.u32 %v2644_v7, %v2641_v12  ;;  %v2481_v7 = vld [vmem:[%s5380_s7 + $0x3c] sm:$0x1] }
  0xa7   : > { %v5496_v58 = vsel %vm4789_vm7, %v3959_v13, %v2828_v38  ;;  %v2479_v13 = vld [vmem:[%s5380_s7 + $0x34] sm:$0x1] }
  0xa8   : > { %v2646_v14 = vrot.slane %v2645_v53, 4 }
  0xab   : > { %4312 = vmatmul.mubr.msk.bf16.vlgmr.msra.gmra.mxu1 %vm505_vm3, %v5262_v55  ;;  %4326 = vmatmul.mubr.msk.bf16.gmra.mxu0 %vm505_vm3, %v5168_v46  ;;  %v5425_v55 = vld [vmem:[%s5380_s7 + $0x28] sm:$0xf]  ;;  %v3957_v46 = vrot.slane %v2466_v37, 9  ;;  %v3960_v37 = vrot.slane %v5417_v29, 9 }
  0xac   : > { %4330 = vmatpush3.bf16.msra.mxu1 %v2391_v59  ;;  %4315 = vmatprep.mubr.msk.bf16.mxu1 %vm505_vm3, %v5287_v2  ;;  %v2617_v2 = vor.u32 %v2616_v3, %v2613_v51  ;;  %v5440_v11 = vcombine.low %v5420_v34, %v5425_v55  ;;  %v2667_v10 = vshrl.u32 %v5425_v55, 16  ;;  %v2670_v60 = vshll.u32 %v5425_v55, 16 }
  0xad   : > { %4341 = vmatprep.mubr.msk.bf16.mxu0 %vm505_vm3, %v3940_v62  ;;  %4451 = vmatprep.subr.msk.bf16.mxu1 %vm518_vm0, %v3948_v39  ;;  %v5451_v4 = vsel %vm4789_vm7, %v3957_v46, %v2820_v5  ;;  %v2634_v59 = vshll.u32 %v2471_v43, 16  ;;  %v2475_v62 = vld [vmem:[%s5380_s7 + $0x24] sm:$0x1]  ;;  %v5500_v46 = vsel %vm4789_vm7, %v3960_v37, %v2832_v54  ;;  %v2659_v5 = vor.u32 %v2658_v52, %v2655_v41 }
  0xae   : > { %v2618_v24 = vrot.slane %v2617_v2, 4  ;;  %v3966_v32 = vcombine.low %v5451_v4, %v5458_v6  ;;  %v2669_v51 = vrot.slane %v2667_v10, 4  ;;  %v2672_v3 = vrot.slane %v2670_v60, 5 }
  0xaf   : > { %v2662_v30 = vshll.u32 %v2475_v62, 16  ;;  %v2676_v2 = vshll.u32 %v2477_v23, 16  ;;  %v2836_v20 = vrot.slane %v2475_v62, 5  ;;  %v2636_v40 = vrot.slane %v2634_v59, 5  ;;  %v5546_v62 = vld [vmem:[%s5380_s7 + $0x40] sm:$0xf] }
  0xb0   : > { %v5492_v39 = vsel %vm4699_vm4, %v2618_v24, %v2622_v50  ;;  %v2673_v25 = vor.u32 %v2672_v3, %v2669_v51  ;;  %v2684_v50 = vshll.u32 %v5444_v18, 16  ;;  %v2632_v4 = vrot.slane %v2631_v8, 4 }
  0xb1   : > { %v3949_v27 = vcombine.low %v2609_v22, %v5492_v39  ;;  %v2650_v43 = vrot.slane %v2648_v16, 5  ;;  %v5525_v24 = vcombine.low %v5496_v58, %v5500_v46  ;;  %v2664_v49 = vrot.slane %v2662_v30, 5 }
  0xb2   : > { %v2678_v9 = vrot.slane %v2676_v2, 5  ;;  %v5529_v15 = vsel %vm4789_vm7, %v3961_v44, %v2836_v20  ;;  %v2683_v10 = vrot.slane %v2681_v45, 4  ;;  %v2674_v60 = vrot.slane %v2673_v25, 4 }
  0xb3   : > { %4316 = vmatmul.mubr.msk.bf16.gmra.mxu1 %vm505_vm3, %v3921_v36  ;;  %4342 = vmatmul.mubr.msk.bf16.vlgmr.msra.gmra.mxu0 %vm505_vm3, %v5434_v17  ;;  %v3962_v36 = vrot.slane %v5425_v55, 9  ;;  %v2686_v38 = vrot.slane %v2684_v50, 5  ;;  %v3963_v37 = vrot.slane %v5444_v18, 9  ;;  %v2844_v54 = vrot.slane %v2479_v13, 5 }
  0xb4   : > { %4331 = vmatprep.mubr.msk.bf16.mxu1 %vm505_vm3, %v5319_v26  ;;  %4360 = vmatpush3.bf16.msra.mxu0 %v2877_v33  ;;  %v5482_v26 = vcombine.low %v5444_v18, %v5447_v21  ;;  %v2840_v33 = vrot.slane %v2477_v23, 5  ;;  %v3964_v52 = vrot.slane %v5447_v21, 9  ;;  %v2848_v22 = vrot.slane %v2481_v7, 5 }
  0xb5   : > { %4345 = vmatprep.mubr.msk.bf16.mxu0 %vm505_vm3, %v5440_v11  ;;  %4454 = vmatprep.subr.msk.bf16.mxu0 %vm518_vm0, %v5463_v35  ;;  %v2637_v23 = vsel %vm4699_vm4, %v2632_v4, %v2636_v40  ;;  %v2651_v16 = vsel %vm4699_vm4, %v2646_v14, %v2650_v43  ;;  %v2690_v3 = vshll.u32 %v2479_v13, 16  ;;  %v2679_v8 = vsel %vm4699_vm4, %v2674_v60, %v2678_v9 }
  0xb6   : > { %v5533_v12 = vsel %vm4789_vm7, %v3962_v36, %v2840_v33  ;;  %v2687_v53 = vor.u32 %v2686_v38, %v2683_v10  ;;  %v5567_v30 = vsel %vm4789_vm7, %v3963_v37, %v2844_v54  ;;  %v5572_v56 = vsel %vm4789_vm7, %v3964_v52, %v2848_v22  ;;  %v4015_v37 = vld [vmem:[%s5950_s3 + $0x68] sm:$0xf]  ;;  %v4008_v52 = vld [vmem:[%s5950_s3 + $0x64] sm:$0xf] }
  0xb7   : > { %v5543_v59 = vcombine.low %v5529_v15, %v5533_v12  ;;  %v3049_v1 = vshrl.u32 %v5546_v62, 16  ;;  %v5579_v44 = vcombine.low %v2637_v23, %v2651_v16  ;;  %v2692_v36 = vrot.slane %v2690_v3, 5 }
  0xb8   : > { %v5585_v45 = vcombine.low %v5567_v30, %v5572_v56  ;;  %v2973_v4 = vsel %vm518_vm0, %v5506_v57, 0  ;;  %v3984_v43 = vcombine.low %v5492_v39, %v2637_v23  ;;  %v3975_v13 = vcombine.low %v5395_v61, %v5412_v0 }
  0xb9   : > { %v3051_v25 = vrot.slane %v3049_v1, 4  ;;  %v3976_v0 = vcombine.low %v5417_v29, %v5420_v34  ;;  %v3978_v29 = vcombine.low %v5447_v21, %v5546_v62  ;;  %v3994_v34 = vcombine.low %v5458_v6, %v5496_v58 }
  0xba   : > { %v3996_v6 = vcombine.low %v5533_v12, %v5567_v30  ;;  %v3992_v58 = vrot.slane %v5546_v62, 9 }
  0xbb   : > { %4332 = vmatmul.mubr.msk.bf16.vlgmr.msra.gmra.mxu1 %vm505_vm3, %v5324_v31  ;;  %4346 = vmatmul.mubr.msk.bf16.gmra.mxu0 %vm505_vm3, %v5482_v26  ;;  %v2698_v31 = vshll.u32 %v5447_v21, 16 }
  0xbc   : > { %4350 = vmatpush3.bf16.msra.mxu1 %v2735_v19  ;;  %4335 = vmatprep.mubr.msk.bf16.mxu1 %vm505_vm3, %v5345_v63  ;;  %v2660_v63 = vrot.slane %v2659_v5, 4  ;;  %v2697_v19 = vrot.slane %v2695_v47, 4  ;;  %v2704_v5 = vshll.u32 %v2481_v7, 16  ;;  %v2483_v47 = vld [vmem:[%s5380_s7 + $0x44] sm:$0x1] }
  0xbd   : > { %4361 = vmatprep.mubr.msk.bf16.mxu0 %vm505_vm3, %v3966_v32  ;;  %4453 = vmatprep.subr.msk.bf16.mxu1 %vm518_vm0, %v5506_v57  ;;  %v2700_v41 = vrot.slane %v2698_v31, 5  ;;  %v3082_v32 = vsel %vm518_vm0, %v5463_v35, 0  ;;  %v4002_v35 = vld [vmem:[%s5950_s3 + $0x60] sm:$0xf]  ;;  %v3993_v31 = vld [vmem:[%s5950_s3 + $0x5c] sm:$0xf] }
  0xbe   : > { %v2665_v51 = vsel %vm4699_vm4, %v2660_v63, %v2664_v49  ;;  %v2706_v33 = vrot.slane %v2704_v5, 5  ;;  %v3058_v49 = vshll.u32 %v2483_v47, 16  ;;  %v3266_v7 = vsel %vm518_vm0, %v4002_v35, 0 }
  0xbf   : > { %v2701_v2 = vor.u32 %v2700_v41, %v2697_v19  ;;  %v5581_v20 = vcombine.low %v2665_v51, %v2679_v8  ;;  %v3985_v9 = vcombine.low %v2651_v16, %v2665_v51  ;;  %v3977_v19 = vcombine.low %v5425_v55, %v5444_v18  ;;  %v2484_v18 = vld [vmem:[%s5380_s7 + $0x48] sm:$0xf]  ;;  %v2485_v16 = vld [vmem:[%s5380_s7 + $0x4c] sm:$0x1]  ;;  %s5846_s7 = scalar_select %p343_p9, %s4553_s18, 7 }
  0xc0   : > { %v3060_v60 = vrot.slane %v3058_v49, 5  ;;  %v3182_v41 = vsel %vm518_vm0, %v3993_v31, 0  ;;  %v3451_v55 = vsel %vm518_vm0, %v4015_v37, 0  ;;  %v4003_v21 = vcombine.low %v5546_v62, %v2484_v18 }
  0xc1   : > { %v2702_v40 = vrot.slane %v2701_v2, 4  ;;  %v3160_v22 = vrot.slane %v2483_v47, 5  ;;  %v3351_v2 = vshll.u32 %v2485_v16, 16  ;;  %s3772_s15 = sshll.u32 %s5846_s7, 3 }
  0xc2   : > { %s347_s19 = sadd.s32 %s3773_s16, %s3772_s15 }
  0xc3   : > { %4336 = vmatmul.mubr.msk.bf16.gmra.mxu1 %vm505_vm3, %v3934_v42  ;;  %4362 = vmatmul.mubr.msk.bf16.vlgmr.msra.gmra.mxu0 %vm505_vm3, %v5525_v24  ;;  %v3052_v42 = vshll.u32 %v5546_v62, 16  ;;  %v2707_v39 = vsel %vm4699_vm4, %v2702_v40, %v2706_v33  ;;  %s3774_s25 = sshll.u32 %s347_s19, 3 }
  0xc4   : > { %4351 = vmatprep.mubr.msk.bf16.mxu1 %vm505_vm3, %v3949_v27  ;;  %4380 = vmatpush3.bf16.msra.mxu0 %v3082_v32  ;;  %v2688_v27 = vrot.slane %v2687_v53, 4  ;;  %s5886_s28 = scalar_lea.vmem %s5951_s4, %s3774_s25 }
  0xc5   : > { %4365 = vmatprep.mubr.msk.bf16.mxu0 %vm505_vm3, %v5543_v59  ;;  %4456 = vmatprep.subr.msk.bf16.mxu0 %vm518_vm0, %v4002_v35  ;;  %v3054_v50 = vrot.slane %v3052_v42, 5  ;;  %v4014_v35 = vrot.slane %v2484_v18, 9 }
  0xc6   : > { %v2693_v57 = vsel %vm4699_vm4, %v2688_v27, %v2692_v36 }
  0xc7   : > { %v3055_v14 = vor.u32 %v3054_v50, %v3051_v25  ;;  %v5606_v63 = vcombine.low %v2693_v57, %v2707_v39  ;;  %v3986_v38 = vcombine.low %v2679_v8, %v2693_v57  ;;  %v3441_v8 = vrot.slane %v2485_v16, 5 }
  0xc8   : > { %v3353_v25 = vrot.slane %v3351_v2, 5 }
  0xc9   : > { %v3056_v10 = vrot.slane %v3055_v14, 4 }
  0xcb   : > { %4352 = vmatmul.mubr.msk.bf16.vlgmr.msra.gmra.mxu1 %vm505_vm3, %v5579_v44  ;;  %4366 = vmatmul.mubr.msk.bf16.gmra.mxu0 %vm505_vm3, %v5585_v45  ;;  %v5620_v61 = vsel %vm4699_vm4, %v3056_v10, %v3060_v60 }
  0xcc   : > { %4370 = vmatpush3.bf16.msra.mxu1 %v2973_v4  ;;  %4355 = vmatprep.mubr.msk.bf16.mxu1 %vm505_vm3, %v5581_v20  ;;  %v3987_v54 = vcombine.low %v2707_v39, %v5620_v61 }
  0xcd   : > { %4381 = vmatprep.mubr.msk.bf16.mxu0 %vm505_vm3, %v3984_v43  ;;  %4455 = vmatprep.subr.msk.bf16.mxu1 %vm518_vm0, %v3993_v31 }
  0xd3   : > { %4356 = vmatmul.mubr.msk.bf16.gmra.mxu1 %vm505_vm3, %v5606_v63  ;;  %4382 = vmatmul.mubr.msk.bf16.vlgmr.msra.gmra.mxu0 %vm505_vm3, %v3985_v9 }
  0xd4   : > { %4371 = vmatprep.mubr.msk.bf16.mxu1 %vm505_vm3, %v3975_v13  ;;  %4400 = vmatpush3.bf16.msra.mxu0 %v3266_v7 }
  0xd5   : > { %4385 = vmatprep.mubr.msk.bf16.mxu0 %vm505_vm3, %v3986_v38  ;;  %4458 = vmatprep.subr.msk.bf16.mxu0 %vm518_vm0, %v4015_v37 }
  0xdb   : > { %4372 = vmatmul.mubr.msk.bf16.vlgmr.msra.gmra.mxu1 %vm505_vm3, %v3976_v0  ;;  %4386 = vmatmul.mubr.msk.bf16.gmra.mxu0 %vm505_vm3, %v3987_v54 }
  0xdc   : > { %4390 = vmatpush3.bf16.msra.mxu1 %v3182_v41  ;;  %4375 = vmatprep.mubr.msk.bf16.mxu1 %vm505_vm3, %v3977_v19 }
  0xdd   : > { %4401 = vmatprep.mubr.msk.bf16.mxu0 %vm505_vm3, %v5434_v17  ;;  %4457 = vmatprep.subr.msk.bf16.mxu1 %vm518_vm0, %v4008_v52  ;;  %v3995_v17 = vcombine.low %v5500_v46, %v5529_v15  ;;  %v3342_v46 = vshrl.u32 %v2484_v18, 16  ;;  %v3345_v15 = vshll.u32 %v2484_v18, 16 }
  0xdf   : > { %v3344_v51 = vrot.slane %v3342_v46, 4  ;;  %v3347_v3 = vrot.slane %v3345_v15, 5 }
  0xe3   : > { %4376 = vmatmul.mubr.msk.bf16.gmra.mxu1 %vm505_vm3, %v3978_v29  ;;  %4402 = vmatmul.mubr.msk.bf16.vlgmr.msra.gmra.mxu0 %vm505_vm3, %v5440_v11  ;;  %v3363_v11 = vsel %vm518_vm0, %v4008_v52, 0 }
  0xe4   : > { %4391 = vmatprep.mubr.msk.bf16.mxu1 %vm505_vm3, %v3994_v34  ;;  %4420 = vmatpush3.bf16.msra.mxu0 %v3451_v55 }
  0xe5   : > { %4405 = vmatprep.mubr.msk.bf16.mxu0 %vm505_vm3, %v5482_v26  ;;  %v3161_v26 = vsel %vm4789_vm7, %v3992_v58, %v3160_v22 }
  0xe6   : > { %v3997_v62 = vcombine.low %v5572_v56, %v3161_v26  ;;  %v3442_v56 = vsel %vm4789_vm7, %v4014_v35, %v3441_v8 }
  0xe7   : > { %v4016_v27 = vcombine.low %v3161_v26, %v3442_v56 }
  0xeb   : > { %4392 = vmatmul.mubr.msk.bf16.vlgmr.msra.gmra.mxu1 %vm505_vm3, %v3995_v17  ;;  %v4163_v32 = vpop.f32.mrf.mxu0  ;;  %4406 = vmatmul.mubr.msk.bf16.gmra.mxu0 %vm505_vm3, %v4003_v21 }
  0xec   : > { %4410 = vmatpush3.bf16.msra.mxu1 %v3363_v11  ;;  %4395 = vmatprep.mubr.msk.bf16.mxu1 %vm505_vm3, %v3996_v6 }
  0xed   : > { %v556_v12 = vpop.f32.mrf.mxu0  ;;  %4421 = vmatprep.mubr.msk.bf16.mxu0 %vm505_vm3, %v5525_v24  ;;  %v3348_v24 = vor.u32 %v3347_v3, %v3344_v51 }
  0xef   : > { %v4164_v23 = vpop.f32.mrf.mxu0  ;;  %v3349_v40 = vrot.slane %v3348_v24, 4 }
  0xf1   : > { %v559_v53 = vpop.f32.mrf.mxu0  ;;  %v3354_v48 = vsel %vm4699_vm4, %v3349_v40, %v3353_v25 }
  0xf2   : > { %v4009_v14 = vcombine.low %v5620_v61, %v3354_v48 }
  0xf3   : > { %v4167_v5 = vpop.f32.mrf.mxu1  ;;  %4396 = vmatmul.mubr.msk.bf16.gmra.mxu1 %vm505_vm3, %v3997_v62  ;;  %v4183_v30 = vpop.f32.mrf.mxu0  ;;  %4422 = vmatmul.mubr.msk.bf16.vlgmr.msra.gmra.mxu0 %vm505_vm3, %v5543_v59 }
  0xf4   : > { %4411 = vmatprep.mubr.msk.bf16.mxu1 %vm505_vm3, %v5579_v44  ;;  %4425 = vmatprep.mubr.msk.bf16.mxu0 %vm505_vm3, %v5585_v45 }
  0xf5   : > { %v572_v1 = vpop.f32.mrf.mxu1  ;;  %v793_v42 = vpop.f32.mrf.mxu0 }
  0xf7   : > { %v4168_v36 = vpop.f32.mrf.mxu1  ;;  %v4184_v33 = vpop.f32.mrf.mxu0 }
  0xf9   : > { %v575_v50 = vpop.f32.mrf.mxu1  ;;  %v796_v59 = vpop.f32.mrf.mxu0 }
  0xfb   : > { %v4173_v4 = vpop.f32.mrf.mxu1  ;;  %4412 = vmatmul.mubr.msk.bf16.vlgmr.msra.gmra.mxu1 %vm505_vm3, %v5581_v20  ;;  %v4187_v44 = vpop.f32.mrf.mxu0  ;;  %4426 = vmatmul.mubr.msk.bf16.gmra.mxu0 %vm505_vm3, %v4016_v27 }
  0xfc   : > { %v665_v45 = vadd.f32 %v4173_v4, %v4163_v32  ;;  %4415 = vmatprep.mubr.msk.bf16.mxu1 %vm505_vm3, %v5606_v63 }
  0xfd   : > { %v656_v43 = vpop.f32.mrf.mxu1  ;;  %v809_v47 = vpop.f32.mrf.mxu0 }
  0xfe   : > { %v826_v31 = vadd.f32 %v4183_v30, %v665_v45  ;;  %v657_v57 = vadd.f32 %v656_v43, %v556_v12 }
  0xff   : > { %v4174_v39 = vpop.f32.mrf.mxu1  ;;  %v4188_v49 = vpop.f32.mrf.mxu0 }
 0x100   : > { %v824_v9 = vadd.f32 %v793_v42, %v657_v57  ;;  %v668_v20 = vadd.f32 %v4174_v39, %v4164_v23 }
 0x101   : > { %v659_v13 = vpop.f32.mrf.mxu1  ;;  %v812_v10 = vpop.f32.mrf.mxu0 }
 0x102   : > { %v827_v60 = vadd.f32 %v4184_v33, %v668_v20  ;;  %v660_v7 = vadd.f32 %v659_v13, %v559_v53 }
 0x103   : > { %v4177_v38 = vpop.f32.mrf.mxu1  ;;  %4416 = vmatmul.mubr.msk.bf16.gmra.mxu1 %vm505_vm3, %v4009_v14  ;;  %v4203_v63 = vpop.f32.mrf.mxu0 }
 0x104   : > { %v825_v28 = vadd.f32 %v796_v59, %v660_v7  ;;  %v681_v37 = vadd.f32 %v4177_v38, %v4167_v5 }
 0x105   : > { %v672_v0 = vpop.f32.mrf.mxu1  ;;  %v998_v54 = vpop.f32.mrf.mxu0 }
 0x106   : > { %v830_v19 = vadd.f32 %v4187_v44, %v681_v37  ;;  %v673_v41 = vadd.f32 %v672_v0, %v572_v1 }
 0x107   : > { %v4178_v52 = vpop.f32.mrf.mxu1  ;;  %v4204_v29 = vpop.f32.mrf.mxu0 }
 0x108   : > { %v828_v61 = vadd.f32 %v809_v47, %v673_v41  ;;  %v684_v34 = vadd.f32 %v4178_v52, %v4168_v36 }
 0x109   : > { %v675_v55 = vpop.f32.mrf.mxu1  ;;  %v1001_v18 = vpop.f32.mrf.mxu0 }
 0x10a   : > { %v831_v17 = vadd.f32 %v4188_v49, %v684_v34  ;;  %v676_v21 = vadd.f32 %v675_v55, %v575_v50 }
 0x10b   : > { %v4193_v6 = vpop.f32.mrf.mxu1  ;;  %v4207_v58 = vpop.f32.mrf.mxu0 }
 0x10c   : > { %v829_v22 = vadd.f32 %v812_v10, %v676_v21  ;;  %v922_v11 = vadd.f32 %v4193_v6, %v826_v31 }
 0x10d   : > { %v889_v32 = vpop.f32.mrf.mxu1  ;;  %v1014_v26 = vpop.f32.mrf.mxu0 }
 0x10e   : > { %v1031_v46 = vadd.f32 %v4203_v63, %v922_v11  ;;  %v920_v15 = vadd.f32 %v889_v32, %v824_v9 }
 0x10f   : > { %v4194_v12 = vpop.f32.mrf.mxu1  ;;  %v4208_v62 = vpop.f32.mrf.mxu0 }
 0x110   : > { %v1029_v23 = vadd.f32 %v998_v54, %v920_v15  ;;  %v923_v16 = vadd.f32 %v4194_v12, %v827_v60 }
 0x111   : > { %v892_v51 = vpop.f32.mrf.mxu1  ;;  %v1017_v3 = vpop.f32.mrf.mxu0 }
 0x112   : > { %v1032_v35 = vadd.f32 %v4204_v29, %v923_v16  ;;  %v921_v8 = vadd.f32 %v892_v51, %v825_v28 }
 0x113   : > { %v4197_v53 = vpop.f32.mrf.mxu1  ;;  %v4223_v5 = vpop.f32.mrf.mxu0 }
 0x114   : > { %v1030_v30 = vadd.f32 %v1001_v18, %v921_v8  ;;  %v926_v24 = vadd.f32 %v4197_v53, %v830_v19 }
 0x115   : > { %v905_v2 = vpop.f32.mrf.mxu1  ;;  %v1182_v56 = vpop.f32.mrf.mxu0 }
 0x116   : > { %v1035_v1 = vadd.f32 %v4207_v58, %v926_v24  ;;  %v924_v42 = vadd.f32 %v905_v2, %v828_v61 }
 0x117   : > { %v4198_v36 = vpop.f32.mrf.mxu1  ;;  %v4224_v33 = vpop.f32.mrf.mxu0 }
 0x118   : > { %v1033_v27 = vadd.f32 %v1014_v26, %v924_v42  ;;  %v927_v40 = vadd.f32 %v4198_v36, %v831_v17 }
 0x119   : > { %v908_v25 = vpop.f32.mrf.mxu1  ;;  %v1185_v50 = vpop.f32.mrf.mxu0 }
 0x11a   : > { %v1036_v59 = vadd.f32 %v4208_v62, %v927_v40  ;;  %v925_v4 = vadd.f32 %v908_v25, %v829_v22 }
 0x11b   : > { %v4213_v44 = vpop.f32.mrf.mxu1  ;;  %v4227_v45 = vpop.f32.mrf.mxu0 }
 0x11c   : > { %v1034_v48 = vadd.f32 %v1017_v3, %v925_v4  ;;  %v1131_v43 = vadd.f32 %v4213_v44, %v1031_v46 }
 0x11d   : > { %v1098_v47 = vpop.f32.mrf.mxu1  ;;  %v1198_v31 = vpop.f32.mrf.mxu0 }
 0x11e   : > { %v1215_v57 = vadd.f32 %v4223_v5, %v1131_v43  ;;  %v1129_v39 = vadd.f32 %v1098_v47, %v1029_v23 }
 0x11f   : > { %v4214_v14 = vpop.f32.mrf.mxu1  ;;  %v4228_v49 = vpop.f32.mrf.mxu0 }
 0x120   : > { %v1213_v9 = vadd.f32 %v1182_v56, %v1129_v39  ;;  %v1132_v20 = vadd.f32 %v4214_v14, %v1032_v35 }
 0x121   : > { %v1101_v13 = vpop.f32.mrf.mxu1  ;;  %v1201_v10 = vpop.f32.mrf.mxu0 }
 0x122   : > { %v1216_v60 = vadd.f32 %v4224_v33, %v1132_v20  ;;  %v1130_v7 = vadd.f32 %v1101_v13, %v1030_v30 }
 0x123   : > { %v4217_v38 = vpop.f32.mrf.mxu1  ;;  %v4243_v63 = vpop.f32.mrf.mxu0 }
 0x124   : > { %v1214_v28 = vadd.f32 %v1185_v50, %v1130_v7  ;;  %v1135_v37 = vadd.f32 %v4217_v38, %v1035_v1 }
 0x125   : > { %v1114_v0 = vpop.f32.mrf.mxu1  ;;  %v1367_v54 = vpop.f32.mrf.mxu0 }
 0x126   : > { %v1219_v19 = vadd.f32 %v4227_v45, %v1135_v37  ;;  %v1133_v41 = vadd.f32 %v1114_v0, %v1033_v27 }
 0x127   : > { %v4218_v52 = vpop.f32.mrf.mxu1  ;;  %v4244_v29 = vpop.f32.mrf.mxu0 }
 0x128   : > { %v1217_v61 = vadd.f32 %v1198_v31, %v1133_v41  ;;  %v1136_v34 = vadd.f32 %v4218_v52, %v1036_v59 }
 0x129   : > { %v1117_v55 = vpop.f32.mrf.mxu1  ;;  %v1370_v18 = vpop.f32.mrf.mxu0 }
 0x12a   : > { %v1220_v17 = vadd.f32 %v4228_v49, %v1136_v34  ;;  %v1134_v21 = vadd.f32 %v1117_v55, %v1034_v48 }
 0x12b   : > { %v4233_v6 = vpop.f32.mrf.mxu1  ;;  %v4247_v58 = vpop.f32.mrf.mxu0 }
 0x12c   : > { %v1218_v22 = vadd.f32 %v1201_v10, %v1134_v21  ;;  %v1312_v11 = vadd.f32 %v4233_v6, %v1215_v57 }
 0x12d   : > { %v1279_v32 = vpop.f32.mrf.mxu1  ;;  %v1383_v26 = vpop.f32.mrf.mxu0 }
 0x12e   : > { %v1400_v46 = vadd.f32 %v4243_v63, %v1312_v11  ;;  %v1310_v15 = vadd.f32 %v1279_v32, %v1213_v9 }
 0x12f   : > { %v4234_v12 = vpop.f32.mrf.mxu1  ;;  %v4248_v62 = vpop.f32.mrf.mxu0 }
 0x130   : > { %v1398_v23 = vadd.f32 %v1367_v54, %v1310_v15  ;;  %v1313_v16 = vadd.f32 %v4234_v12, %v1216_v60 }
 0x131   : > { %v1282_v51 = vpop.f32.mrf.mxu1  ;;  %v1386_v3 = vpop.f32.mrf.mxu0 }
 0x132   : > { %v1401_v35 = vadd.f32 %v4244_v29, %v1313_v16  ;;  %v1311_v8 = vadd.f32 %v1282_v51, %v1214_v28 }
 0x133   : > { %v4237_v53 = vpop.f32.mrf.mxu1  ;;  %v4263_v5 = vpop.f32.mrf.mxu0 }
 0x134   : > { %v1399_v30 = vadd.f32 %v1370_v18, %v1311_v8  ;;  %v1316_v24 = vadd.f32 %v4237_v53, %v1219_v19 }
 0x135   : > { %v1295_v2 = vpop.f32.mrf.mxu1  ;;  %v1711_v56 = vpop.f32.mrf.mxu0 }
 0x136   : > { %v1404_v1 = vadd.f32 %v4247_v58, %v1316_v24  ;;  %v1314_v42 = vadd.f32 %v1295_v2, %v1217_v61 }
 0x137   : > { %v4238_v36 = vpop.f32.mrf.mxu1  ;;  %v4264_v33 = vpop.f32.mrf.mxu0 }
 0x138   : > { %v1402_v27 = vadd.f32 %v1383_v26, %v1314_v42  ;;  %v1317_v40 = vadd.f32 %v4238_v36, %v1220_v17 }
 0x139   : > { %v1298_v25 = vpop.f32.mrf.mxu1  ;;  %v1714_v50 = vpop.f32.mrf.mxu0 }
 0x13a   : > { %v1405_v59 = vadd.f32 %v4248_v62, %v1317_v40  ;;  %v1315_v4 = vadd.f32 %v1298_v25, %v1218_v22 }
 0x13b   : > { %v4253_v44 = vpop.f32.mrf.mxu1  ;;  %v4267_v45 = vpop.f32.mrf.mxu0 }
 0x13c   : > { %v1403_v48 = vadd.f32 %v1386_v3, %v1315_v4  ;;  %v1530_v43 = vadd.f32 %v4253_v44, %v1400_v46 }
 0x13d   : > { %v1497_v47 = vpop.f32.mrf.mxu1  ;;  %v1727_v31 = vpop.f32.mrf.mxu0 }
 0x13e   : > { %v1744_v57 = vadd.f32 %v4263_v5, %v1530_v43  ;;  %v1528_v39 = vadd.f32 %v1497_v47, %v1398_v23 }
 0x13f   : > { %v4254_v14 = vpop.f32.mrf.mxu1  ;;  %v4268_v49 = vpop.f32.mrf.mxu0 }
 0x140   : > { %v1742_v9 = vadd.f32 %v1711_v56, %v1528_v39  ;;  %v1531_v20 = vadd.f32 %v4254_v14, %v1401_v35 }
 0x141   : > { %v1500_v13 = vpop.f32.mrf.mxu1  ;;  %v1730_v10 = vpop.f32.mrf.mxu0 }
 0x142   : > { %v1745_v60 = vadd.f32 %v4264_v33, %v1531_v20  ;;  %v1529_v7 = vadd.f32 %v1500_v13, %v1399_v30 }
 0x143   : > { %v4257_v38 = vpop.f32.mrf.mxu1  ;;  %v4283_v63 = vpop.f32.mrf.mxu0 }
 0x144   : > { %v1743_v28 = vadd.f32 %v1714_v50, %v1529_v7  ;;  %v1534_v37 = vadd.f32 %v4257_v38, %v1404_v1 }
 0x145   : > { %v1513_v0 = vpop.f32.mrf.mxu1  ;;  %v1949_v54 = vpop.f32.mrf.mxu0 }
 0x146   : > { %v1748_v19 = vadd.f32 %v4267_v45, %v1534_v37  ;;  %v1532_v41 = vadd.f32 %v1513_v0, %v1402_v27 }
 0x147   : > { %v4258_v52 = vpop.f32.mrf.mxu1  ;;  %v4284_v29 = vpop.f32.mrf.mxu0 }
 0x148   : > { %v1746_v61 = vadd.f32 %v1727_v31, %v1532_v41  ;;  %v1535_v34 = vadd.f32 %v4258_v52, %v1405_v59 }
 0x149   : > { %v1516_v55 = vpop.f32.mrf.mxu1  ;;  %v1952_v18 = vpop.f32.mrf.mxu0 }
 0x14a   : > { %v1749_v17 = vadd.f32 %v4268_v49, %v1535_v34  ;;  %v1533_v21 = vadd.f32 %v1516_v55, %v1403_v48 }
 0x14b   : > { %v4273_v6 = vpop.f32.mrf.mxu1  ;;  %v4287_v58 = vpop.f32.mrf.mxu0 }
 0x14c   : > { %v1747_v22 = vadd.f32 %v1730_v10, %v1533_v21  ;;  %v1886_v11 = vadd.f32 %v4273_v6, %v1744_v57 }
 0x14d   : > { %v1853_v32 = vpop.f32.mrf.mxu1  ;;  %v1965_v26 = vpop.f32.mrf.mxu0 }
 0x14e   : > { %v1982_v46 = vadd.f32 %v4283_v63, %v1886_v11  ;;  %v1884_v15 = vadd.f32 %v1853_v32, %v1742_v9 }
 0x14f   : > { %v4274_v12 = vpop.f32.mrf.mxu1  ;;  %v4288_v62 = vpop.f32.mrf.mxu0 }
 0x150   : > { %v1980_v23 = vadd.f32 %v1949_v54, %v1884_v15  ;;  %v1887_v16 = vadd.f32 %v4274_v12, %v1745_v60 }
 0x151   : > { %v1856_v51 = vpop.f32.mrf.mxu1  ;;  %v1968_v3 = vpop.f32.mrf.mxu0 }
 0x152   : > { %v1983_v35 = vadd.f32 %v4284_v29, %v1887_v16  ;;  %v1885_v8 = vadd.f32 %v1856_v51, %v1743_v28 }
 0x153   : > { %v4277_v53 = vpop.f32.mrf.mxu1  ;;  %v4303_v5 = vpop.f32.mrf.mxu0 }
 0x154   : > { %v1981_v30 = vadd.f32 %v1952_v18, %v1885_v8  ;;  %v1890_v24 = vadd.f32 %v4277_v53, %v1748_v19 }
 0x155   : > { %v1869_v2 = vpop.f32.mrf.mxu1  ;;  %v2158_v56 = vpop.f32.mrf.mxu0 }
 0x156   : > { %v1986_v1 = vadd.f32 %v4287_v58, %v1890_v24  ;;  %v1888_v42 = vadd.f32 %v1869_v2, %v1746_v61 }
 0x157   : > { %v4278_v36 = vpop.f32.mrf.mxu1  ;;  %v4304_v33 = vpop.f32.mrf.mxu0 }
 0x158   : > { %v1984_v27 = vadd.f32 %v1965_v26, %v1888_v42  ;;  %v1891_v40 = vadd.f32 %v4278_v36, %v1749_v17 }
 0x159   : > { %v1872_v25 = vpop.f32.mrf.mxu1  ;;  %v2161_v50 = vpop.f32.mrf.mxu0 }
 0x15a   : > { %v1987_v59 = vadd.f32 %v4288_v62, %v1891_v40  ;;  %v1889_v4 = vadd.f32 %v1872_v25, %v1747_v22 }
 0x15b   : > { %v4293_v44 = vpop.f32.mrf.mxu1  ;;  %v4307_v45 = vpop.f32.mrf.mxu0 }
 0x15c   : > { %v1985_v48 = vadd.f32 %v1968_v3, %v1889_v4  ;;  %v2091_v43 = vadd.f32 %v4293_v44, %v1982_v46 }
 0x15d   : > { %v2058_v47 = vpop.f32.mrf.mxu1  ;;  %v2174_v31 = vpop.f32.mrf.mxu0 }
 0x15e   : > { %v5685_v57 = vadd.f32 %v4303_v5, %v2091_v43  ;;  %v2089_v39 = vadd.f32 %v2058_v47, %v1980_v23 }
 0x15f   : > { %v4294_v14 = vpop.f32.mrf.mxu1  ;;  %v4308_v49 = vpop.f32.mrf.mxu0 }
 0x160   : > { %v5687_v9 = vadd.f32 %v2158_v56, %v2089_v39  ;;  %v2092_v20 = vadd.f32 %v4294_v14, %v1983_v35 }
 0x161   : > { %v2061_v13 = vpop.f32.mrf.mxu1  ;;  %v2177_v10 = vpop.f32.mrf.mxu0 }
 0x162   : > { %v5689_v60 = vadd.f32 %v4304_v33, %v2092_v20  ;;  %v2090_v7 = vadd.f32 %v2061_v13, %v1981_v30 }
 0x163   : > { %v4297_v38 = vpop.f32.mrf.mxu1  ;;  %v5691_v63 = vpop.f32.mrf.mxu0 }
 0x164   : > { %v5693_v28 = vadd.f32 %v2161_v50, %v2090_v7  ;;  %v2095_v37 = vadd.f32 %v4297_v38, %v1986_v1 }
 0x165   : > { %v2074_v0 = vpop.f32.mrf.mxu1  ;;  %v5695_v54 = vpop.f32.mrf.mxu0 }
 0x166   : > { %v5697_v19 = vadd.f32 %v4307_v45, %v2095_v37  ;;  %v2093_v41 = vadd.f32 %v2074_v0, %v1984_v27 }
 0x167   : > { %v4298_v52 = vpop.f32.mrf.mxu1  ;;  %v5699_v29 = vpop.f32.mrf.mxu0 }
 0x168   : > { %v5701_v61 = vadd.f32 %v2174_v31, %v2093_v41  ;;  %v2096_v34 = vadd.f32 %v4298_v52, %v1987_v59 }
 0x169   : > { %v2077_v55 = vpop.f32.mrf.mxu1  ;;  %v5703_v18 = vpop.f32.mrf.mxu0 }
 0x16a   : > { %v5705_v17 = vadd.f32 %v4308_v49, %v2096_v34  ;;  %v2094_v21 = vadd.f32 %v2077_v55, %v1985_v48 }
 0x16b   : > { %v4313_v6 = vpop.f32.mrf.mxu1  ;;  %v5707_v58 = vpop.f32.mrf.mxu0 }
 0x16c   : > { %v5709_v22 = vadd.f32 %v2177_v10, %v2094_v21 }
 0x16d   : > { %v2242_v11 = vpop.f32.mrf.mxu1  ;;  %v5711_v32 = vpop.f32.mrf.mxu0 }
 0x16f   : > { %v4314_v26 = vpop.f32.mrf.mxu1  ;;  %v5713_v46 = vpop.f32.mrf.mxu0 }
 0x171   : > { %v2245_v15 = vpop.f32.mrf.mxu1  ;;  %v5715_v12 = vpop.f32.mrf.mxu0 }
 0x173   : > { %v4317_v62 = vpop.f32.mrf.mxu1  ;;  %v5717_v23 = vpop.f32.mrf.mxu0 }
 0x175   : > { %v2258_v16 = vpop.f32.mrf.mxu1  ;;  %v5719_v51 = vpop.f32.mrf.mxu0 }
 0x177   : > { %v5721_v3 = vpop.f32.mrf.mxu1  ;;  %v5723_v35 = vpop.f32.mrf.mxu0 }
 0x179   : > { %v5725_v8 = vpop.f32.mrf.mxu1  ;;  %v5727_v53 = vpop.f32.mrf.mxu0 }
 0x17b   : > { %v4333_v5 = vpop.f32.mrf.mxu1  ;;  %v5729_v30 = vpop.f32.mrf.mxu0 }
 0x17d   : > { %v2427_v24 = vpop.f32.mrf.mxu1  ;;  %v5731_v2 = vpop.f32.mrf.mxu0 }
 0x17f   : > { %v4334_v56 = vpop.f32.mrf.mxu1  ;;  %v5733_v1 = vpop.f32.mrf.mxu0 }
 0x181   : > { %v2430_v42 = vpop.f32.mrf.mxu1  ;;  %v5735_v36 = vpop.f32.mrf.mxu0 }
 0x183   : > { %v5737_v33 = vpop.f32.mrf.mxu1  ;;  %v5739_v27 = vpop.f32.mrf.mxu0 }
 0x185   : > { %v5741_v40 = vpop.f32.mrf.mxu1  ;;  %v5743_v25 = vpop.f32.mrf.mxu0 }
 0x187   : > { %v5745_v50 = vpop.f32.mrf.mxu1  ;;  %v5747_v59 = vpop.f32.mrf.mxu0 }
 0x189   : > { %v5749_v4 = vpop.f32.mrf.mxu1  ;;  %v5751_v44 = vpop.f32.mrf.mxu0 }
 0x18b   : > { %v4353_v45 = vpop.f32.mrf.mxu1  ;;  %v5753_v48 = vpop.f32.mrf.mxu0 }
 0x18c   : > { %5959 = vst [vmem:[#allocation2_spill] sm:$0xff] %v5753_v48 }
 0x18d   : > { %v2771_v43 = vpop.f32.mrf.mxu1  ;;  %v5755_v47 = vpop.f32.mrf.mxu0 }
 0x18e   : > { %5960 = vst [vmem:[#allocation3_spill] sm:$0xff] %v5755_v47 }
 0x18f   : > { %v4354_v31 = vpop.f32.mrf.mxu1  ;;  %v5757_v39 = vpop.f32.mrf.mxu0 }
 0x190   : > { %5961 = vst [vmem:[#allocation4_spill] sm:$0xff] %v5757_v39 }
 0x191   : > { %v5759_v14 = vpop.f32.mrf.mxu1  ;;  %v5761_v49 = vpop.f32.mrf.mxu0 }
 0x192   : > { %5962 = vst [vmem:[#allocation5_spill] sm:$0xff] %v5761_v49  ;;  %v2275_v49 = vadd.f32 %v4313_v6, %v5685_v57 }
 0x193   : > { %v5763_v20 = vpop.f32.mrf.mxu1  ;;  %v5765_v13 = vpop.f32.mrf.mxu0 }
 0x195   : > { %v5767_v10 = vpop.f32.mrf.mxu1  ;;  %v5769_v7 = vpop.f32.mrf.mxu0 }
 0x196   : > { %5963 = vst [vmem:[#allocation6_spill] sm:$0xff] %v5769_v7 }
 0x197   : > { %v5771_v38 = vpop.f32.mrf.mxu1  ;;  %v5773_v37 = vpop.f32.mrf.mxu0 }
 0x198   : > { %5964 = vst [vmem:[#allocation7_spill] sm:$0xff] %v5771_v38  ;;  %5965 = vst [vmem:[#allocation8_spill] sm:$0xff] %v5773_v37  ;;  %v2273_v38 = vadd.f32 %v2242_v11, %v5687_v9 }
 0x199   : > { %v5775_v0 = vpop.f32.mrf.mxu1  ;;  %v5777_v41 = vpop.f32.mrf.mxu0 }
 0x19a   : > { %5966 = vst [vmem:[#allocation9_spill] sm:$0xff] %v5775_v0  ;;  %5967 = vst [vmem:[#allocation10_spill] sm:$0xff] %v5777_v41  ;;  %v2372_v41 = vadd.f32 %v5691_v63, %v2275_v49  ;;  %v2370_v57 = vadd.f32 %v5695_v54, %v2273_v38 }
 0x19b   : > { %v4373_v52 = vpop.f32.mrf.mxu1  ;;  %v5779_v34 = vpop.f32.mrf.mxu0 }
 0x19c   : > { %5968 = vst [vmem:[#allocation11_spill] sm:$0xff] %v5779_v34  ;;  %v2276_v34 = vadd.f32 %v4314_v26, %v5689_v60  ;;  %v2460_v6 = vadd.f32 %v4333_v5, %v2372_v41  ;;  %v2458_v63 = vadd.f32 %v2427_v24, %v2370_v57  ;;  %v2277_v60 = vadd.f32 %v2258_v16, %v5701_v61 }
 0x19d   : > { %v5781_v55 = vpop.f32.mrf.mxu1  ;;  %v5783_v21 = vpop.f32.mrf.mxu0  ;;  %v2280_v16 = vadd.f32 %v5721_v3, %v5705_v17 }
 0x19e   : > { %5969 = vst [vmem:[#allocation12_spill] sm:$0xff] %v5783_v21  ;;  %v2274_v21 = vadd.f32 %v2245_v15, %v5693_v28  ;;  %v2373_v11 = vadd.f32 %v5699_v29, %v2276_v34  ;;  %v2590_v54 = vadd.f32 %v5717_v23, %v2460_v6  ;;  %v2374_v61 = vadd.f32 %v5711_v32, %v2277_v60  ;;  %v5972_v60 = vld [vmem:[#allocation2_spill] sm:$0xff] }
 0x19f   : > { %v5786_v39 = vpop.f32.mrf.mxu1  ;;  %v5788_v47 = vpop.f32.mrf.mxu0  ;;  %v2278_v23 = vadd.f32 %v5725_v8, %v5709_v22  ;;  %v2377_v3 = vadd.f32 %v5713_v46, %v2280_v16 }
 0x1a0   : > { %5970 = vst [vmem:[#allocation13_spill] sm:$0xff] %v5788_v47  ;;  %v2461_v5 = vadd.f32 %v4334_v56, %v2373_v11  ;;  %v2371_v28 = vadd.f32 %v5703_v18, %v2274_v21  ;;  %v2462_v32 = vadd.f32 %v5741_v40, %v2374_v61 }
 0x1a1   : > { %v5791_v37 = vpop.f32.mrf.mxu1  ;;  %v5793_v0 = vpop.f32.mrf.mxu0  ;;  %v2375_v8 = vadd.f32 %v5715_v12, %v2278_v23  ;;  %v2465_v46 = vadd.f32 %v5745_v50, %v2377_v3 }
 0x1a2   : > { %5971 = vst [vmem:[#allocation14_spill] sm:$0xff] %v5793_v0  ;;  %v2279_v0 = vadd.f32 %v4317_v62, %v5697_v19  ;;  %v2588_v19 = vadd.f32 %v5719_v51, %v2458_v63  ;;  %v2804_v62 = vadd.f32 %v4353_v45, %v2590_v54  ;;  %v2459_v24 = vadd.f32 %v2430_v42, %v2371_v28  ;;  %v5973_v54 = vld [vmem:[#allocation6_spill] sm:$0xff]  ;;  %v5974_v28 = vld [vmem:[#allocation3_spill] sm:$0xff] }
 0x1a3   : > { %v5797_v7 = vpop.f32.mrf.mxu1  ;;  %v5799_v48 = vpop.f32.mrf.mxu0  ;;  %v2591_v41 = vadd.f32 %v5723_v35, %v2461_v5  ;;  %v2463_v12 = vadd.f32 %v5749_v4, %v2375_v8  ;;  %v2595_v4 = vadd.f32 %v5733_v1, %v2465_v46 }
 0x1a4   : > { %v2376_v29 = vadd.f32 %v5707_v58, %v2279_v0  ;;  %v2802_v58 = vadd.f32 %v2771_v43, %v2588_v19  ;;  %v2946_v17 = vadd.f32 %v5739_v27, %v2804_v62  ;;  %v2589_v35 = vadd.f32 %v5727_v53, %v2459_v24 }
 0x1a5   : > { %v5803_v47 = vpop.f32.mrf.mxu1  ;;  %v5805_v9 = vpop.f32.mrf.mxu0  ;;  %v2805_v22 = vadd.f32 %v4354_v31, %v2591_v41  ;;  %v2592_v27 = vadd.f32 %v5731_v2, %v2462_v32  ;;  %v5978_v32 = vld [vmem:[#allocation4_spill] sm:$0xff] }
 0x1a6   : > { %v2464_v34 = vadd.f32 %v5737_v33, %v2376_v29  ;;  %v2944_v0 = vadd.f32 %v5743_v25, %v2802_v58  ;;  %v3042_v40 = vadd.f32 %v4373_v52, %v2946_v17  ;;  %v2803_v53 = vadd.f32 %v5759_v14, %v2589_v35 }
 0x1a7   : > { %v5810_v26 = vpop.f32.mrf.mxu1  ;;  %v5812_v49 = vpop.f32.mrf.mxu0  ;;  %v2806_v57 = vadd.f32 %v5767_v10, %v2592_v27  ;;  %v2593_v14 = vadd.f32 %v5735_v36, %v2463_v12  ;;  %v5977_v36 = vld [vmem:[#allocation8_spill] sm:$0xff] }
 0x1a8   : > { %v2594_v43 = vadd.f32 %v5729_v30, %v2464_v34  ;;  %v2947_v30 = vadd.f32 %v5747_v59, %v2805_v22  ;;  %v3040_v52 = vadd.f32 %v5781_v55, %v2944_v0  ;;  %v3151_v2 = vadd.f32 %v5765_v13, %v3042_v40  ;;  %v5975_v13 = vld [vmem:[#allocation7_spill] sm:$0xff]  ;;  %v5979_v22 = vld [vmem:[#allocation5_spill] sm:$0xff]  ;;  %v5982_v27 = vld [vmem:[#allocation12_spill] sm:$0xff] }
 0x1a9   : > { %v5816_v15 = vpop.f32.mrf.mxu1  ;;  %v5818_v38 = vpop.f32.mrf.mxu0  ;;  %v2945_v59 = vadd.f32 %v5751_v44, %v2803_v53  ;;  %v2948_v29 = vadd.f32 %v5974_v28, %v2806_v57  ;;  %v2809_v19 = vadd.f32 %v5975_v13, %v2595_v4 }
 0x1aa   : > { %v2808_v25 = vadd.f32 %v5763_v20, %v2594_v43  ;;  %v3043_v50 = vadd.f32 %v5786_v39, %v2947_v30  ;;  %v3149_v10 = vadd.f32 %v5973_v54, %v3040_v52  ;;  %v5976_v39 = vld [vmem:[#allocation9_spill] sm:$0xff]  ;;  %v5981_v43 = vld [vmem:[#allocation11_spill] sm:$0xff] }
 0x1ab   : > { %v4393_v56 = vpop.f32.mrf.mxu1  ;;  %v5827_v18 = vpop.f32.mrf.mxu0  ;;  %v2807_v62 = vadd.f32 %v5976_v39, %v2593_v14  ;;  %v3041_v61 = vadd.f32 %v5791_v37, %v2945_v59  ;;  %v3044_v41 = vadd.f32 %v5803_v47, %v2948_v29  ;;  %v2951_v17 = vadd.f32 %v5978_v32, %v2809_v19  ;;  %v5980_v37 = vld [vmem:[#allocation10_spill] sm:$0xff] }
 0x1ac   : > { %v2950_v55 = vadd.f32 %v5972_v60, %v2808_v25  ;;  %v3251_v5 = vadd.f32 %v4393_v56, %v3151_v2  ;;  %v3152_v16 = vadd.f32 %v5977_v36, %v3043_v50  ;;  %v5983_v2 = vld [vmem:[#allocation13_spill] sm:$0xff]  ;;  %v5984_v59 = vld [vmem:[#allocation14_spill] sm:$0xff] }
 0x1ad   : > { %v3218_v51 = vpop.f32.mrf.mxu1  ;;  %v5833_v45 = vpop.f32.mrf.mxu0  ;;  %v2949_v3 = vadd.f32 %v5979_v22, %v2807_v62  ;;  %v3150_v8 = vadd.f32 %v5980_v37, %v3041_v61  ;;  %v3153_v47 = vadd.f32 %v5982_v27, %v3044_v41  ;;  %v3047_v46 = vadd.f32 %v5810_v26, %v2951_v17 }
 0x1ae   : > { %v3046_v44 = vadd.f32 %v5797_v7, %v2950_v55  ;;  %v3249_v23 = vadd.f32 %v3218_v51, %v3149_v10  ;;  %v3335_v56 = vadd.f32 %v5799_v48, %v3251_v5 }
 0x1af   : > { %v4394_v42 = vpop.f32.mrf.mxu1  ;;  %v5839_v33 = vpop.f32.mrf.mxu0  ;;  %v3045_v48 = vadd.f32 %v5816_v15, %v2949_v3  ;;  %v3156_v50 = vadd.f32 %v5983_v2, %v3047_v46 }
 0x1b0   : > { %v3252_v58 = vadd.f32 %v4394_v42, %v3152_v16  ;;  %v3155_v0 = vadd.f32 %v5981_v43, %v3046_v44  ;;  %v3333_v7 = vadd.f32 %v5805_v9, %v3249_v23 }
 0x1b1   : > { %v3221_v31 = vpop.f32.mrf.mxu1  ;;  %v5852_v21 = vpop.f32.mrf.mxu0  ;;  %v3154_v60 = vadd.f32 %v5984_v59, %v3045_v48 }
 0x1b2   : > { %v3250_v42 = vadd.f32 %v3221_v31, %v3150_v8  ;;  %v3336_v53 = vadd.f32 %v5812_v49, %v3252_v58 }
 0x1b3   : > { %v4397_v6 = vpop.f32.mrf.mxu1  ;;  %v4423_v11 = vpop.f32.mrf.mxu0 }
 0x1b4   : > { %v3255_v9 = vadd.f32 %v4397_v6, %v3155_v0  ;;  %v3334_v4 = vadd.f32 %v5818_v38, %v3250_v42 }
 0x1b5   : > { %v3234_v63 = vpop.f32.mrf.mxu1  ;;  %v3487_v20 = vpop.f32.mrf.mxu0 }
 0x1b6   : > { %v3253_v57 = vadd.f32 %v3234_v63, %v3153_v47  ;;  %v3339_v49 = vadd.f32 %v5827_v18, %v3255_v9 }
 0x1b7   : > { %v4398_v1 = vpop.f32.mrf.mxu1  ;;  %v4424_v24 = vpop.f32.mrf.mxu0 }
 0x1b9   : > { %v3237_v34 = vpop.f32.mrf.mxu1  ;;  %v3490_v40 = vpop.f32.mrf.mxu0 }
 0x1ba   : > { %v3254_v54 = vadd.f32 %v3237_v34, %v3154_v60 }
 0x1bb   : > { %v4413_v35 = vpop.f32.mrf.mxu1  ;;  %v4427_v31 = vpop.f32.mrf.mxu0 }
 0x1bc   : > { %v3432_v51 = vadd.f32 %v4413_v35, %v3335_v56  ;;  %v3338_v36 = vadd.f32 %v5852_v21, %v3254_v54 }
 0x1bd   : > { %v3399_v12 = vpop.f32.mrf.mxu1  ;;  %v3503_v5 = vpop.f32.mrf.mxu0 }
 0x1be   : > { %v3520_v30 = vadd.f32 %v4423_v11, %v3432_v51  ;;  %v3430_v25 = vadd.f32 %v3399_v12, %v3333_v7  ;;  %v3256_v11 = vadd.f32 %v4398_v1, %v3156_v50 }
 0x1bf   : > { %v4414_v52 = vpop.f32.mrf.mxu1 }
 0x1c0   : > { %3528 = vst.msk [vmem:[%s5886_s28 + $0x10] sm:$0xff] %vm505_vm3, %v3520_v30  ;;  %v3518_v26 = vadd.f32 %v3487_v20, %v3430_v25  ;;  %v3433_v15 = vadd.f32 %v4414_v52, %v3336_v53  ;;  %v3337_v20 = vadd.f32 %v5833_v45, %v3253_v57  ;;  %v3557_v13 = vmul.f32 %v3520_v30, %v3520_v30 }
 0x1c1   : > { %v3402_v14 = vpop.f32.mrf.mxu1  ;;  %v3340_v39 = vadd.f32 %v5839_v33, %v3256_v11  ;;  %v3537_v16 = vsel %vm505_vm3, %v3520_v30, 0.0 }
 0x1c2   : > { %3526 = vst.msk [vmem:[%s5886_s28] sm:$0xff] %vm505_vm3, %v3518_v26  ;;  %v3521_v6 = vadd.f32 %v4424_v24, %v3433_v15  ;;  %v3431_v63 = vadd.f32 %v3402_v14, %v3334_v4  ;;  %v3555_v38 = vmul.f32 %v3518_v26, %v3518_v26  ;;  %v3534_v62 = vsel %vm505_vm3, %v3518_v26, 0.0  ;;  %v4428_v24 = vpop.f32.mrf.mxu0 }
 0x1c3   : > { %v4417_v55 = vpop.f32.mrf.mxu1  ;;  %v3566_v32 = vsel %vm505_vm3, %v3557_v13, 0.0 }
 0x1c4   : > { %3529 = vst.msk [vmem:[%s5886_s28 + $0x18] sm:$0xff] %vm505_vm3, %v3521_v6  ;;  %v3436_v10 = vadd.f32 %v4417_v55, %v3339_v49  ;;  %v3519_v28 = vadd.f32 %v3490_v40, %v3431_v63  ;;  %v3563_v33 = vsel %vm505_vm3, %v3555_v38, 0.0  ;;  %v3558_v41 = vmul.f32 %v3521_v6, %v3521_v6  ;;  %v3506_v0 = vpop.f32.mrf.mxu0 }
 0x1c5   : > { %v3415_v29 = vpop.f32.mrf.mxu1  ;;  %v3539_v21 = vsel %vm505_vm3, %v3521_v6, 0.0 }
 0x1c6   : > { %v3524_v18 = vadd.f32 %v4427_v31, %v3436_v10  ;;  %v3434_v19 = vadd.f32 %v3415_v29, %v3337_v20  ;;  %3527 = vst.msk [vmem:[%s5886_s28 + $0x8] sm:$0xff] %vm505_vm3, %v3519_v28  ;;  %v3535_v45 = vsel %vm505_vm3, %v3519_v28, 0.0  ;;  %v3556_v61 = vmul.f32 %v3519_v28, %v3519_v28 }
 0x1c7   : > { %v4418_v1 = vpop.f32.mrf.mxu1  ;;  %v3536_v44 = vadd.f32 %v3535_v45, %v3534_v62  ;;  %v3568_v7 = vsel %vm505_vm3, %v3558_v41, 0.0 }
 0x1c8   : > { %3532 = vst.msk [vmem:[%s5886_s28 + $0x30] sm:$0xff] %vm505_vm3, %v3524_v18  ;;  %v3522_v23 = vadd.f32 %v3503_v5, %v3434_v19  ;;  %v3564_v34 = vsel %vm505_vm3, %v3556_v61, 0.0  ;;  %v3437_v56 = vadd.f32 %v4418_v1, %v3340_v39  ;;  %v3561_v46 = vmul.f32 %v3524_v18, %v3524_v18 }
 0x1c9   : > { %v3418_v58 = vpop.f32.mrf.mxu1  ;;  %v3538_v17 = vadd.f32 %v3537_v16, %v3536_v44  ;;  %v3565_v22 = vadd.f32 %v3564_v34, %v3563_v33  ;;  %v3545_v30 = vsel %vm505_vm3, %v3524_v18, 0.0 }
 0x1ca   : > { %3530 = vst.msk [vmem:[%s5886_s28 + $0x20] sm:$0xff] %vm505_vm3, %v3522_v23  ;;  %v3559_v3 = vmul.f32 %v3522_v23, %v3522_v23  ;;  %v3525_v37 = vadd.f32 %v4428_v24, %v3437_v56  ;;  %v3435_v8 = vadd.f32 %v3418_v58, %v3338_v36  ;;  %v3541_v51 = vsel %vm505_vm3, %v3522_v23, 0.0 }
 0x1cb   : > { %v3567_v35 = vadd.f32 %v3566_v32, %v3565_v22  ;;  %v3540_v43 = vadd.f32 %v3539_v21, %v3538_v17  ;;  %v3574_v15 = vsel %vm505_vm3, %v3561_v46, 0.0 }
 0x1cc   : > { %3533 = vst.msk [vmem:[%s5886_s28 + $0x38] sm:$0xff] %vm505_vm3, %v3525_v37  ;;  %v3523_v40 = vadd.f32 %v3506_v0, %v3435_v8  ;;  %v3570_v48 = vsel %vm505_vm3, %v3559_v3, 0.0  ;;  %v3562_v25 = vmul.f32 %v3525_v37, %v3525_v37  ;;  %v3547_v31 = vsel %vm505_vm3, %v3525_v37, 0.0 }
 0x1cd   : > { %v3542_v27 = vadd.f32 %v3541_v51, %v3540_v43  ;;  %v3569_v47 = vadd.f32 %v3568_v7, %v3567_v35 }
 0x1ce   : > { %3531 = vst.msk [vmem:[%s5886_s28 + $0x28] sm:$0xff] %vm505_vm3, %v3523_v40  ;;  %v3543_v42 = vsel %vm505_vm3, %v3523_v40, 0.0  ;;  %v3560_v12 = vmul.f32 %v3523_v40, %v3523_v40  ;;  %v3576_v4 = vsel %vm505_vm3, %v3562_v25, 0.0 }
 0x1cf   : > { %v3571_v53 = vadd.f32 %v3570_v48, %v3569_v47  ;;  %v3544_v9 = vadd.f32 %v3543_v42, %v3542_v27 }
 0x1d0   : > { %v3572_v52 = vsel %vm505_vm3, %v3560_v12, 0.0 }
 0x1d1   : > { %v3546_v57 = vadd.f32 %v3545_v30, %v3544_v9  ;;  %v3573_v26 = vadd.f32 %v3572_v52, %v3571_v53 }
 0x1d3   : > { %v3548_v2 = vadd.f32 %v3547_v31, %v3546_v57  ;;  %v3575_v50 = vadd.f32 %v3574_v15, %v3573_v26 }
 0x1d5   : > { %v3549_v14 = vrot.slane %v3548_v2, 4  ;;  %v3577_v59 = vadd.f32 %v3576_v4, %v3575_v50 }
 0x1d7   : > { %v3550_v60 = vadd.f32 %v3549_v14, %v3548_v2  ;;  %v3578_v49 = vrot.slane %v3577_v59, 4 }
 0x1d9   : > { %v3551_v6 = vrot.slane %v3550_v60, 2  ;;  %v3579_v11 = vadd.f32 %v3578_v49, %v3577_v59 }
 0x1db   : > { %v3552_v63 = vadd.f32 %v3551_v6, %v3550_v60  ;;  %v3580_v55 = vrot.slane %v3579_v11, 2 }
 0x1dd   : > { %v3553_v20 = vrot.slane %v3552_v63, 1  ;;  %v3581_v54 = vadd.f32 %v3580_v55, %v3579_v11  ;;  %3587 = sbr.rel (%p4021_p10) target bundleno = 484 (0x1e4), region = 40 }
 0x1df   : > { %v3554_v10 = vadd.f32 %v3553_v20, %v3552_v63  ;;  %v3582_v5 = vrot.slane %v3581_v54, 1 }
 0x1e1   : > { %v3583_v38 = vadd.f32 %v3582_v5, %v3581_v54 }
 0x1e2   : > { %vm3588_vm8 = vcmask 58368   ;;  %v4571_v28 = vmov 0.0  }
 0x1e3   : > { %3589 = vst.msk [vmem:[%s4659_s12] sm:$0x3] %vm3588_vm8, %v4571_v28 }
 0x1e4 PF: > { %vm3591_vm9 = vcmask 1040384   ;;  %vm3594_vm10 = vcmask 58368  }
 0x1e5   : > { %v3592_v13 = vsel %vm3591_vm9, %v3554_v10, %v3583_v38 }
 0x1ea   : > { %v3590_v29 = vld [vmem:[%s4659_s12] sm:$0x3] }
 0x1eb   : > { %v3593_v18 = vadd.f32 %v3592_v13, %v3590_v29 }
 0x1ed   : > { %3595 = vst.msk [vmem:[%s4659_s12] sm:$0x3] %vm3594_vm10, %v3593_v18 }
 0x1ee PF: > { %s16_s22 = sadd.s32 1, %s4569_s22   ;;  %s5985_s18 = smov %s4561_s20 }
 0x1ef   : > { %p13_p11 = scmp.ge.s32.totalorder %s16_s22, 18   ;;  %s5986_s19 = smov %s4565_s21 }
 0x1f0   : > { %s5987_s20 = smov %s5990_s23  ;;  %s5988_s21 = smov %s5994_s24 }
 0x1f1   :  { %15 = sbr.rel (!%p13_p11) target bundleno = 3 (0x3), region = 114 }

</bundles_post_ra>
